<compile_context>
chip_gen: v5e
topology: v5e:2x2
jax: 0.10.0
libtpu: 0.0.40
codegen_flags: <defaults>
</compile_context>

<pallas_src>
import functools

import jax
import jax.numpy as jnp
import numpy as np
from jax.experimental import pallas as pl
from jax.experimental.pallas import tpu as pltpu

PREDICTION_HORIZONS = [1, 5, 10, 20]
NUM_HORIZONS = len(PREDICTION_HORIZONS)
GRU_HIDDEN = 64
GATE_PAD = 128                        # each GRU gate padded to its own 128-lane group
PER_HORIZON_COLS = 10                 # [perf, mastery, completion, ttm, diff_readiness(6)]
TOTAL_OUT_COLS = NUM_HORIZONS * PER_HORIZON_COLS + NUM_HORIZONS   # 44 real columns
OUT_PAD_COLS = 128                    # lane-dense output slab
DEFAULT_B_TILE = 512


def _round_up(x, m):
    return (x + m - 1) // m * m


def _ppn_kernel(x_ref, w1_ref, b1_ref, w2_ref, b2_ref, w3_ref, b3_ref,
                wih1_ref, bi1_ref, bhn1_ref,
                wih2_ref, bi2_ref, bhn2_ref,
                whead_ref, bhead_ref,
                ttm_mask_ref, dr_mask_ref, gsum_ref,
                out_ref):
    f32 = jnp.float32
    bf16 = jnp.bfloat16
    GP = GATE_PAD

    # ---- feature encoder: 3 dense layers + ReLU (dropout == identity in eval) ----
    x = x_ref[...]                                                # (BT, F) bf16
    h = jnp.dot(x, w1_ref[...], preferred_element_type=f32) + b1_ref[...]
    h = jnp.maximum(h, 0.0)
    h = jnp.dot(h.astype(bf16), w2_ref[...], preferred_element_type=f32) + b2_ref[...]
    h = jnp.maximum(h, 0.0)
    enc = jnp.dot(h.astype(bf16), w3_ref[...], preferred_element_type=f32) + b3_ref[...]

    # ---- 2-layer GRU, single timestep, h_prev == 0 ----
    # PyTorch gate order r|z|n. With h_prev == 0:
    #   r = sigmoid(x@Wr + b_ih_r + b_hh_r)       (b_hh_r folded host-side)
    #   z = sigmoid(x@Wz + b_ih_z + b_hh_z)       (folded host-side)
    #   n = tanh   (x@Wn + b_ih_n + r * b_hh_n)
    #   h' = (1 - z) * n
    # Gates are padded to 128 lanes each; pad lanes yield exactly 0 in h'.
    def gru_cell(xt, wih_ref, bias_ref, bhn_ref):
        gi = jnp.dot(xt.astype(bf16), wih_ref[...],
                     preferred_element_type=f32) + bias_ref[...]  # (BT, 3*GP)
        r = jax.nn.sigmoid(gi[:, 0:GP])
        z = jax.nn.sigmoid(gi[:, GP:2 * GP])
        n = jnp.tanh(gi[:, 2 * GP:3 * GP] + r * bhn_ref[...])
        return (1.0 - z) * n                                      # (BT, 128)

    h1 = gru_cell(enc, wih1_ref, bi1_ref, bhn1_ref)
    fs = gru_cell(h1, wih2_ref, bi2_ref, bhn2_ref)

    # ---- fused prediction heads: single (128, 128) matmul -> lane-dense logits ----
    logits = jnp.dot(fs.astype(bf16), whead_ref[...],
                     preferred_element_type=f32) + bhead_ref[...]  # (BT, 128)

    ttm_mask = ttm_mask_ref[...]                                   # (1, 128) {0,1} f32
    dr_mask = dr_mask_ref[...]                                     # (1, 128) {0,1} f32
    sig_mask = 1.0 - ttm_mask - dr_mask

    # all four 6-wide softmaxes at once: masked stabilized exp + block-diagonal
    # indicator matmul that produces every group's denominator per column.
    masked = logits - (1.0 - dr_mask) * 1e30
    m = jnp.max(masked, axis=-1, keepdims=True)                    # row max over dr cols
    pexp = jnp.exp(masked - m)                                     # exactly 0 off dr cols
    denom = jnp.dot(pexp, gsum_ref[...], preferred_element_type=f32)
    smax = pexp / (denom + (1.0 - dr_mask))                        # denom > 0 on dr cols

    sig = jax.nn.sigmoid(logits)
    ttm = jnp.maximum(logits, 0.0) * 100.0

    out_ref[...] = sig_mask * sig + ttm_mask * ttm + dr_mask * smax


def _head_masks():
    """Column masks + block-diagonal group-sum indicator for the fused 128-col head."""
    col = np.arange(OUT_PAD_COLS)
    in_head = col < NUM_HORIZONS * PER_HORIZON_COLS
    ttm = in_head & (col % PER_HORIZON_COLS == 3)
    dr = in_head & (col % PER_HORIZON_COLS >= 4)
    group = col // PER_HORIZON_COLS
    gsum = (dr[:, None] & dr[None, :]
            & (group[:, None] == group[None, :])).astype(np.float32)
    return (jnp.asarray(ttm.astype(np.float32)[None, :]),
            jnp.asarray(dr.astype(np.float32)[None, :]),
            jnp.asarray(gsum))


def init_params(key, input_features):
    """Deterministic synthetic logical parameters ((in, out) layout, f32)."""
    def dense(k, fan_in, fan_out):
        kw, kb = jax.random.split(k)
        scale = 1.0 / np.sqrt(fan_in)
        w = jax.random.uniform(kw, (fan_in, fan_out), jnp.float32, -scale, scale)
        b = jax.random.uniform(kb, (1, fan_out), jnp.float32, -scale, scale)
        return w, b

    keys = jax.random.split(key, 9)
    p = {}
    p["w1"], p["b1"] = dense(keys[0], input_features, 512)
    p["w2"], p["b2"] = dense(keys[1], 512, 256)
    p["w3"], p["b3"] = dense(keys[2], 256, 128)
    # GRU layer 1 (128 -> 64), layer 2 (64 -> 64); gates stacked r|z|n
    p["wih1"], p["bih1"] = dense(keys[3], 128, 3 * GRU_HIDDEN)
    _, p["bhh1"] = dense(keys[4], GRU_HIDDEN, 3 * GRU_HIDDEN)
    p["wih2"], p["bih2"] = dense(keys[5], GRU_HIDDEN, 3 * GRU_HIDDEN)
    _, p["bhh2"] = dense(keys[6], GRU_HIDDEN, 3 * GRU_HIDDEN)
    # fused prediction heads: per horizon 10 cols + NUM_HORIZONS confidence cols
    p["whead"], p["bhead"] = dense(keys[7], GRU_HIDDEN, TOTAL_OUT_COLS)
    return p


def pack_params(p):
    """Host-side repack: bf16 matmul weights, vreg-aligned (128-lane) GRU gates with
    folded b_hh(r,z), lane-dense 128-column head, and the head masks/indicator."""
    bf16 = jnp.bfloat16
    H = GRU_HIDDEN
    GP = GATE_PAD

    def pad_cols(a, width):
        return jnp.pad(a, ((0, 0), (0, width - a.shape[1])))

    def pack_gru(wih, bih, bhh, in_pad):
        wih = jnp.pad(wih, ((0, in_pad - wih.shape[0]), (0, 0)))
        w_parts, b_parts = [], []
        for g in range(3):
            w_parts.append(pad_cols(wih[:, g * H:(g + 1) * H], GP))
            bg = bih[:, g * H:(g + 1) * H]
            if g < 2:                          # fold b_hh into r and z (h_prev == 0)
                bg = bg + bhh[:, g * H:(g + 1) * H]
            b_parts.append(pad_cols(bg, GP))
        w = jnp.concatenate(w_parts, axis=1).astype(bf16)          # (in_pad, 3*GP)
        b = jnp.concatenate(b_parts, axis=1)                       # (1, 3*GP) f32
        bhn = pad_cols(bhh[:, 2 * H:3 * H], GP)                    # (1, GP) f32
        return w, b, bhn

    kp = {
        "w1": p["w1"].astype(bf16), "b1": p["b1"],
        "w2": p["w2"].astype(bf16), "b2": p["b2"],
        "w3": p["w3"].astype(bf16), "b3": p["b3"],
    }
    kp["wih1"], kp["bi1"], kp["bhn1"] = pack_gru(p["wih1"], p["bih1"], p["bhh1"], 128)
    kp["wih2"], kp["bi2"], kp["bhn2"] = pack_gru(p["wih2"], p["bih2"], p["bhh2"], GP)
    whead = jnp.pad(p["whead"], ((0, GP - H), (0, OUT_PAD_COLS - TOTAL_OUT_COLS)))
    kp["whead"] = whead.astype(bf16)                               # (128, 128)
    kp["bhead"] = pad_cols(p["bhead"], OUT_PAD_COLS)               # (1, 128) f32
    kp["ttm_mask"], kp["dr_mask"], kp["gsum"] = _head_masks()
    return kp


@functools.partial(jax.jit, static_argnames=("b_tile",))
def ppn_forward_raw(features, kparams, *, b_tile=DEFAULT_B_TILE):
    """Runs the batch-tiled Pallas kernel; returns the flat (B, TOTAL_OUT_COLS) output."""
    B, F = features.shape
    bt = _round_up(min(b_tile, _round_up(B, 16)), 16)   # sublane-aligned batch tile
    Bp = _round_up(B, bt)

    x = features.astype(jnp.bfloat16)                    # halve input DMA bytes
    if Bp != B:
        x = jnp.pad(x, ((0, Bp - B), (0, 0)))

    def const_spec(a):
        # weights/biases/masks: DMA'd once, stay VMEM-resident across the batch grid
        return pl.BlockSpec(a.shape, lambda i: (0,) * a.ndim)

    weight_names = ["w1", "b1", "w2", "b2", "w3", "b3",
                    "wih1", "bi1", "bhn1", "wih2", "bi2", "bhn2",
                    "whead", "bhead", "ttm_mask", "dr_mask", "gsum"]
    weights = [kparams[n] for n in weight_names]

    flat = pl.pallas_call(
        _ppn_kernel,
        out_shape=jax.ShapeDtypeStruct((Bp, OUT_PAD_COLS), jnp.float32),
        grid=(Bp // bt,),
        in_specs=[pl.BlockSpec((bt, F), lambda i: (i, 0))]
                 + [const_spec(a) for a in weights],
        out_specs=pl.BlockSpec((bt, OUT_PAD_COLS), lambda i: (i, 0)),
        compiler_params=pltpu.CompilerParams(
            dimension_semantics=("parallel",),
            vmem_limit_bytes=32 * 1024 * 1024),
    )(x, *weights)
    return flat[:B, :TOTAL_OUT_COLS]


def ppn_forward(features, kparams):
    """Reshapes the flat kernel output into the PyTorch-style nested dict."""
    flat = ppn_forward_raw(features, kparams)
    predictions = {}
    for hi, horizon in enumerate(PREDICTION_HORIZONS):
        base = hi * PER_HORIZON_COLS
        predictions[f"horizon_{horizon}"] = {
            "performance_score": flat[:, base + 0:base + 1],
            "mastery_level": flat[:, base + 1:base + 2],
            "completion_probability": flat[:, base + 2:base + 3],
            "time_to_mastery": flat[:, base + 3:base + 4],
            "difficulty_readiness": flat[:, base + 4:base + 10],
        }
    predictions["confidence_scores"] = flat[:, NUM_HORIZONS * PER_HORIZON_COLS:]
    return predictions


def ppn_reference(features, params):
    """Pure-JAX reference with the same bf16-matmul / f32-elementwise dtype policy."""
    f32, bf16 = jnp.float32, jnp.bfloat16
    H = GRU_HIDDEN

    def mm(a, w):
        return jnp.dot(a.astype(bf16), w.astype(bf16), preferred_element_type=f32)

    h = jnp.maximum(mm(features, params["w1"]) + params["b1"], 0.0)
    h = jnp.maximum(mm(h, params["w2"]) + params["b2"], 0.0)
    enc = mm(h, params["w3"]) + params["b3"]

    def gru_cell(xt, wih, bih, bhh):
        gi = mm(xt, wih) + bih
        r = jax.nn.sigmoid(gi[:, :H] + bhh[:, :H])
        z = jax.nn.sigmoid(gi[:, H:2 * H] + bhh[:, H:2 * H])
        n = jnp.tanh(gi[:, 2 * H:] + r * bhh[:, 2 * H:])
        return (1.0 - z) * n

    h1 = gru_cell(enc, params["wih1"], params["bih1"], params["bhh1"])
    fs = gru_cell(h1, params["wih2"], params["bih2"], params["bhh2"])
    logits = mm(fs, params["whead"]) + params["bhead"]

    pieces = []
    for hi in range(NUM_HORIZONS):
        base = hi * PER_HORIZON_COLS
        pieces.extend([
            jax.nn.sigmoid(logits[:, base + 0:base + 1]),
            jax.nn.sigmoid(logits[:, base + 1:base + 2]),
            jax.nn.sigmoid(logits[:, base + 2:base + 3]),
            jnp.maximum(logits[:, base + 3:base + 4], 0.0) * 100.0,
            jax.nn.softmax(logits[:, base + 4:base + 10], axis=-1),
        ])
    pieces.append(jax.nn.sigmoid(logits[:, NUM_HORIZONS * PER_HORIZON_COLS:]))
    return jnp.concatenate(pieces, axis=-1)


if __name__ == "__main__":
    B = 4
    INPUT_FEATURES = 200  # module default `input_features`

    key = jax.random.PRNGKey(0)
    k_params, k_x = jax.random.split(key)
    params = init_params(k_params, INPUT_FEATURES)
    kparams = pack_params(params)
    features = jax.random.normal(k_x, (B, INPUT_FEATURES), dtype=jnp.float32)

    flat_out = ppn_forward_raw(features, kparams)
    jax.block_until_ready(flat_out)

    # correctness check against the pure-JAX reference (same dtype policy)
    ref = ppn_reference(features, params)
    np.testing.assert_allclose(np.asarray(flat_out), np.asarray(ref),
                               rtol=2e-3, atol=2e-3)

    preds = ppn_forward(features, kparams)
    assert preds["confidence_scores"].shape == (B, NUM_HORIZONS)
    assert preds["horizon_1"]["difficulty_readiness"].shape == (B, 6)
    jax.block_until_ready(preds["confidence_scores"])

    print("KERNEL_OK")
</pallas_src>

<mosaic_0001>
module attributes {stable_mosaic.version = 11 : i64} {
  func.func @_ppn_kernel(%arg0: i32, %arg1: memref<16x200xbf16, #tpu.memory_space<vmem>>, %arg2: memref<200x512xbf16, #tpu.memory_space<vmem>>, %arg3: memref<1x512xf32, #tpu.memory_space<vmem>>, %arg4: memref<512x256xbf16, #tpu.memory_space<vmem>>, %arg5: memref<1x256xf32, #tpu.memory_space<vmem>>, %arg6: memref<256x128xbf16, #tpu.memory_space<vmem>>, %arg7: memref<1x128xf32, #tpu.memory_space<vmem>>, %arg8: memref<128x384xbf16, #tpu.memory_space<vmem>>, %arg9: memref<1x384xf32, #tpu.memory_space<vmem>>, %arg10: memref<1x128xf32, #tpu.memory_space<vmem>>, %arg11: memref<128x384xbf16, #tpu.memory_space<vmem>>, %arg12: memref<1x384xf32, #tpu.memory_space<vmem>>, %arg13: memref<1x128xf32, #tpu.memory_space<vmem>>, %arg14: memref<128x128xbf16, #tpu.memory_space<vmem>>, %arg15: memref<1x128xf32, #tpu.memory_space<vmem>>, %arg16: memref<1x128xf32, #tpu.memory_space<vmem>>, %arg17: memref<1x128xf32, #tpu.memory_space<vmem>>, %arg18: memref<128x128xf32, #tpu.memory_space<vmem>>, %arg19: memref<16x128xf32, #tpu.memory_space<vmem>>) attributes {dimension_semantics = [#tpu.dimension_semantics<parallel>], iteration_bounds = array<i64: 1>, scalar_prefetch = 0 : i64, scratch_operands = 0 : i64, tpu.core_type = #tpu.core_type<tc>, window_params = [{transform_indices = @transform_0, window_bounds = array<i64: 16, 200>}, {pipeline_mode = #tpu.pipeline_mode<synchronous>, transform_indices = @transform_1, window_bounds = array<i64: 200, 512>}, {pipeline_mode = #tpu.pipeline_mode<synchronous>, transform_indices = @transform_2, window_bounds = array<i64: 1, 512>}, {pipeline_mode = #tpu.pipeline_mode<synchronous>, transform_indices = @transform_3, window_bounds = array<i64: 512, 256>}, {pipeline_mode = #tpu.pipeline_mode<synchronous>, transform_indices = @transform_4, window_bounds = array<i64: 1, 256>}, {pipeline_mode = #tpu.pipeline_mode<synchronous>, transform_indices = @transform_5, window_bounds = array<i64: 256, 128>}, {pipeline_mode = #tpu.pipeline_mode<synchronous>, transform_indices = @transform_6, window_bounds = array<i64: 1, 128>}, {pipeline_mode = #tpu.pipeline_mode<synchronous>, transform_indices = @transform_7, window_bounds = array<i64: 128, 384>}, {pipeline_mode = #tpu.pipeline_mode<synchronous>, transform_indices = @transform_8, window_bounds = array<i64: 1, 384>}, {pipeline_mode = #tpu.pipeline_mode<synchronous>, transform_indices = @transform_9, window_bounds = array<i64: 1, 128>}, {pipeline_mode = #tpu.pipeline_mode<synchronous>, transform_indices = @transform_10, window_bounds = array<i64: 128, 384>}, {pipeline_mode = #tpu.pipeline_mode<synchronous>, transform_indices = @transform_11, window_bounds = array<i64: 1, 384>}, {pipeline_mode = #tpu.pipeline_mode<synchronous>, transform_indices = @transform_12, window_bounds = array<i64: 1, 128>}, {pipeline_mode = #tpu.pipeline_mode<synchronous>, transform_indices = @transform_13, window_bounds = array<i64: 128, 128>}, {pipeline_mode = #tpu.pipeline_mode<synchronous>, transform_indices = @transform_14, window_bounds = array<i64: 1, 128>}, {pipeline_mode = #tpu.pipeline_mode<synchronous>, transform_indices = @transform_15, window_bounds = array<i64: 1, 128>}, {pipeline_mode = #tpu.pipeline_mode<synchronous>, transform_indices = @transform_16, window_bounds = array<i64: 1, 128>}, {pipeline_mode = #tpu.pipeline_mode<synchronous>, transform_indices = @transform_17, window_bounds = array<i64: 128, 128>}, {transform_indices = @transform_18, window_bounds = array<i64: 16, 128>}]} {
    %c0 = arith.constant 0 : index
    %c0_0 = arith.constant 0 : index
    %0 = vector.load %arg1[%c0, %c0_0] : memref<16x200xbf16, #tpu.memory_space<vmem>>, vector<16x200xbf16>
    %c0_1 = arith.constant 0 : index
    %c0_2 = arith.constant 0 : index
    %1 = vector.load %arg2[%c0_1, %c0_2] : memref<200x512xbf16, #tpu.memory_space<vmem>>, vector<200x512xbf16>
    %cst = arith.constant dense<0.000000e+00> : vector<16x512xf32>
    %2 = tpu.matmul %0, %1, %cst {dimension_numbers = #tpu.dot_dimension_numbers<[1], [0], [0], [1], [0, 0, 1, 1], [], []>} : vector<16x200xbf16>, vector<200x512xbf16>, vector<16x512xf32> -> vector<16x512xf32>
    %c0_3 = arith.constant 0 : index
    %c0_4 = arith.constant 0 : index
    %3 = vector.load %arg3[%c0_3, %c0_4] : memref<1x512xf32, #tpu.memory_space<vmem>>, vector<1x512xf32>
    %4 = vector.broadcast %3 : vector<1x512xf32> to vector<16x512xf32>
    %5 = arith.addf %2, %4 : vector<16x512xf32>
    %cst_5 = arith.constant 0.000000e+00 : f32
    %6 = vector.broadcast %cst_5 : f32 to vector<16x512xf32>
    %7 = arith.maximumf %5, %6 : vector<16x512xf32>
    %8 = arith.truncf %7 : vector<16x512xf32> to vector<16x512xbf16>
    %c0_6 = arith.constant 0 : index
    %c0_7 = arith.constant 0 : index
    %9 = vector.load %arg4[%c0_6, %c0_7] : memref<512x256xbf16, #tpu.memory_space<vmem>>, vector<512x256xbf16>
    %cst_8 = arith.constant dense<0.000000e+00> : vector<16x256xf32>
    %10 = tpu.matmul %8, %9, %cst_8 {dimension_numbers = #tpu.dot_dimension_numbers<[1], [0], [0], [1], [0, 0, 1, 1], [], []>} : vector<16x512xbf16>, vector<512x256xbf16>, vector<16x256xf32> -> vector<16x256xf32>
    %c0_9 = arith.constant 0 : index
    %c0_10 = arith.constant 0 : index
    %11 = vector.load %arg5[%c0_9, %c0_10] : memref<1x256xf32, #tpu.memory_space<vmem>>, vector<1x256xf32>
    %12 = vector.broadcast %11 : vector<1x256xf32> to vector<16x256xf32>
    %13 = arith.addf %10, %12 : vector<16x256xf32>
    %cst_11 = arith.constant 0.000000e+00 : f32
    %14 = vector.broadcast %cst_11 : f32 to vector<16x256xf32>
    %15 = arith.maximumf %13, %14 : vector<16x256xf32>
    %16 = arith.truncf %15 : vector<16x256xf32> to vector<16x256xbf16>
    %c0_12 = arith.constant 0 : index
    %c0_13 = arith.constant 0 : index
    %17 = vector.load %arg6[%c0_12, %c0_13] : memref<256x128xbf16, #tpu.memory_space<vmem>>, vector<256x128xbf16>
    %cst_14 = arith.constant dense<0.000000e+00> : vector<16x128xf32>
    %18 = tpu.matmul %16, %17, %cst_14 {dimension_numbers = #tpu.dot_dimension_numbers<[1], [0], [0], [1], [0, 0, 1, 1], [], []>} : vector<16x256xbf16>, vector<256x128xbf16>, vector<16x128xf32> -> vector<16x128xf32>
    %c0_15 = arith.constant 0 : index
    %c0_16 = arith.constant 0 : index
    %19 = vector.load %arg7[%c0_15, %c0_16] : memref<1x128xf32, #tpu.memory_space<vmem>>, vector<1x128xf32>
    %20 = vector.broadcast %19 : vector<1x128xf32> to vector<16x128xf32>
    %21 = arith.addf %18, %20 : vector<16x128xf32>
    %22 = arith.truncf %21 : vector<16x128xf32> to vector<16x128xbf16>
    %c0_17 = arith.constant 0 : index
    %c0_18 = arith.constant 0 : index
    %23 = vector.load %arg8[%c0_17, %c0_18] : memref<128x384xbf16, #tpu.memory_space<vmem>>, vector<128x384xbf16>
    %cst_19 = arith.constant dense<0.000000e+00> : vector<16x384xf32>
    %24 = tpu.matmul %22, %23, %cst_19 {dimension_numbers = #tpu.dot_dimension_numbers<[1], [0], [0], [1], [0, 0, 1, 1], [], []>} : vector<16x128xbf16>, vector<128x384xbf16>, vector<16x384xf32> -> vector<16x384xf32>
    %c0_20 = arith.constant 0 : index
    %c0_21 = arith.constant 0 : index
    %25 = vector.load %arg9[%c0_20, %c0_21] : memref<1x384xf32, #tpu.memory_space<vmem>>, vector<1x384xf32>
    %26 = vector.broadcast %25 : vector<1x384xf32> to vector<16x384xf32>
    %27 = arith.addf %24, %26 : vector<16x384xf32>
    %28 = vector.extract_strided_slice %27 {offsets = [0, 0], sizes = [16, 128], strides = [1, 1]} : vector<16x384xf32> to vector<16x128xf32>
    %29 = arith.negf %28 : vector<16x128xf32>
    %30 = math.exp %29 : vector<16x128xf32>
    %cst_22 = arith.constant 1.000000e+00 : f32
    %31 = vector.broadcast %cst_22 : f32 to vector<16x128xf32>
    %32 = arith.addf %31, %30 : vector<16x128xf32>
    %33 = arith.divf %31, %32 : vector<16x128xf32>
    %34 = vector.extract_strided_slice %27 {offsets = [0, 128], sizes = [16, 128], strides = [1, 1]} : vector<16x384xf32> to vector<16x128xf32>
    %35 = arith.negf %34 : vector<16x128xf32>
    %36 = math.exp %35 : vector<16x128xf32>
    %cst_23 = arith.constant 1.000000e+00 : f32
    %37 = vector.broadcast %cst_23 : f32 to vector<16x128xf32>
    %38 = arith.addf %37, %36 : vector<16x128xf32>
    %39 = arith.divf %37, %38 : vector<16x128xf32>
    %40 = vector.extract_strided_slice %27 {offsets = [0, 256], sizes = [16, 128], strides = [1, 1]} : vector<16x384xf32> to vector<16x128xf32>
    %c0_24 = arith.constant 0 : index
    %c0_25 = arith.constant 0 : index
    %41 = vector.load %arg10[%c0_24, %c0_25] : memref<1x128xf32, #tpu.memory_space<vmem>>, vector<1x128xf32>
    %42 = vector.broadcast %41 : vector<1x128xf32> to vector<16x128xf32>
    %43 = arith.mulf %33, %42 : vector<16x128xf32>
    %44 = arith.addf %40, %43 : vector<16x128xf32>
    %45 = math.tanh %44 : vector<16x128xf32>
    %cst_26 = arith.constant 1.000000e+00 : f32
    %46 = vector.broadcast %cst_26 : f32 to vector<16x128xf32>
    %47 = arith.subf %46, %39 : vector<16x128xf32>
    %48 = arith.mulf %47, %45 : vector<16x128xf32>
    %49 = arith.truncf %48 : vector<16x128xf32> to vector<16x128xbf16>
    %c0_27 = arith.constant 0 : index
    %c0_28 = arith.constant 0 : index
    %50 = vector.load %arg11[%c0_27, %c0_28] : memref<128x384xbf16, #tpu.memory_space<vmem>>, vector<128x384xbf16>
    %cst_29 = arith.constant dense<0.000000e+00> : vector<16x384xf32>
    %51 = tpu.matmul %49, %50, %cst_29 {dimension_numbers = #tpu.dot_dimension_numbers<[1], [0], [0], [1], [0, 0, 1, 1], [], []>} : vector<16x128xbf16>, vector<128x384xbf16>, vector<16x384xf32> -> vector<16x384xf32>
    %c0_30 = arith.constant 0 : index
    %c0_31 = arith.constant 0 : index
    %52 = vector.load %arg12[%c0_30, %c0_31] : memref<1x384xf32, #tpu.memory_space<vmem>>, vector<1x384xf32>
    %53 = vector.broadcast %52 : vector<1x384xf32> to vector<16x384xf32>
    %54 = arith.addf %51, %53 : vector<16x384xf32>
    %55 = vector.extract_strided_slice %54 {offsets = [0, 0], sizes = [16, 128], strides = [1, 1]} : vector<16x384xf32> to vector<16x128xf32>
    %56 = arith.negf %55 : vector<16x128xf32>
    %57 = math.exp %56 : vector<16x128xf32>
    %cst_32 = arith.constant 1.000000e+00 : f32
    %58 = vector.broadcast %cst_32 : f32 to vector<16x128xf32>
    %59 = arith.addf %58, %57 : vector<16x128xf32>
    %60 = arith.divf %58, %59 : vector<16x128xf32>
    %61 = vector.extract_strided_slice %54 {offsets = [0, 128], sizes = [16, 128], strides = [1, 1]} : vector<16x384xf32> to vector<16x128xf32>
    %62 = arith.negf %61 : vector<16x128xf32>
    %63 = math.exp %62 : vector<16x128xf32>
    %cst_33 = arith.constant 1.000000e+00 : f32
    %64 = vector.broadcast %cst_33 : f32 to vector<16x128xf32>
    %65 = arith.addf %64, %63 : vector<16x128xf32>
    %66 = arith.divf %64, %65 : vector<16x128xf32>
    %67 = vector.extract_strided_slice %54 {offsets = [0, 256], sizes = [16, 128], strides = [1, 1]} : vector<16x384xf32> to vector<16x128xf32>
    %c0_34 = arith.constant 0 : index
    %c0_35 = arith.constant 0 : index
    %68 = vector.load %arg13[%c0_34, %c0_35] : memref<1x128xf32, #tpu.memory_space<vmem>>, vector<1x128xf32>
    %69 = vector.broadcast %68 : vector<1x128xf32> to vector<16x128xf32>
    %70 = arith.mulf %60, %69 : vector<16x128xf32>
    %71 = arith.addf %67, %70 : vector<16x128xf32>
    %72 = math.tanh %71 : vector<16x128xf32>
    %cst_36 = arith.constant 1.000000e+00 : f32
    %73 = vector.broadcast %cst_36 : f32 to vector<16x128xf32>
    %74 = arith.subf %73, %66 : vector<16x128xf32>
    %75 = arith.mulf %74, %72 : vector<16x128xf32>
    %76 = arith.truncf %75 : vector<16x128xf32> to vector<16x128xbf16>
    %c0_37 = arith.constant 0 : index
    %c0_38 = arith.constant 0 : index
    %77 = vector.load %arg14[%c0_37, %c0_38] : memref<128x128xbf16, #tpu.memory_space<vmem>>, vector<128x128xbf16>
    %cst_39 = arith.constant dense<0.000000e+00> : vector<16x128xf32>
    %78 = tpu.matmul %76, %77, %cst_39 {dimension_numbers = #tpu.dot_dimension_numbers<[1], [0], [0], [1], [0, 0, 1, 1], [], []>} : vector<16x128xbf16>, vector<128x128xbf16>, vector<16x128xf32> -> vector<16x128xf32>
    %c0_40 = arith.constant 0 : index
    %c0_41 = arith.constant 0 : index
    %79 = vector.load %arg15[%c0_40, %c0_41] : memref<1x128xf32, #tpu.memory_space<vmem>>, vector<1x128xf32>
    %80 = vector.broadcast %79 : vector<1x128xf32> to vector<16x128xf32>
    %81 = arith.addf %78, %80 : vector<16x128xf32>
    %c0_42 = arith.constant 0 : index
    %c0_43 = arith.constant 0 : index
    %82 = vector.load %arg16[%c0_42, %c0_43] : memref<1x128xf32, #tpu.memory_space<vmem>>, vector<1x128xf32>
    %c0_44 = arith.constant 0 : index
    %c0_45 = arith.constant 0 : index
    %83 = vector.load %arg17[%c0_44, %c0_45] : memref<1x128xf32, #tpu.memory_space<vmem>>, vector<1x128xf32>
    %cst_46 = arith.constant 1.000000e+00 : f32
    %84 = vector.broadcast %cst_46 : f32 to vector<1x128xf32>
    %85 = arith.subf %84, %82 : vector<1x128xf32>
    %86 = arith.subf %85, %83 : vector<1x128xf32>
    %cst_47 = arith.constant 1.000000e+00 : f32
    %87 = vector.broadcast %cst_47 : f32 to vector<1x128xf32>
    %88 = arith.subf %87, %83 : vector<1x128xf32>
    %cst_48 = arith.constant 1.000000e+30 : f32
    %89 = vector.broadcast %cst_48 : f32 to vector<1x128xf32>
    %90 = arith.mulf %88, %89 : vector<1x128xf32>
    %91 = vector.broadcast %90 : vector<1x128xf32> to vector<16x128xf32>
    %92 = arith.subf %81, %91 : vector<16x128xf32>
    %cst_49 = arith.constant dense<0xFF800000> : vector<16xf32>
    %93 = vector.multi_reduction <maximumf>, %92, %cst_49 [1] : vector<16x128xf32> to vector<16xf32>
    %94 = vector.shape_cast %93 : vector<16xf32> to vector<16x1xf32>
    %95 = vector.broadcast %94 : vector<16x1xf32> to vector<16x128xf32>
    %96 = arith.subf %92, %95 : vector<16x128xf32>
    %97 = math.exp %96 : vector<16x128xf32>
    %c0_50 = arith.constant 0 : index
    %c0_51 = arith.constant 0 : index
    %98 = vector.load %arg18[%c0_50, %c0_51] : memref<128x128xf32, #tpu.memory_space<vmem>>, vector<128x128xf32>
    %cst_52 = arith.constant dense<0.000000e+00> : vector<16x128xf32>
    %99 = tpu.matmul %97, %98, %cst_52 {dimension_numbers = #tpu.dot_dimension_numbers<[1], [0], [0], [1], [0, 0, 1, 1], [], []>} : vector<16x128xf32>, vector<128x128xf32>, vector<16x128xf32> -> vector<16x128xf32>
    %cst_53 = arith.constant 1.000000e+00 : f32
    %100 = vector.broadcast %cst_53 : f32 to vector<1x128xf32>
    %101 = arith.subf %100, %83 : vector<1x128xf32>
    %102 = vector.broadcast %101 : vector<1x128xf32> to vector<16x128xf32>
    %103 = arith.addf %99, %102 : vector<16x128xf32>
    %104 = arith.divf %97, %103 : vector<16x128xf32>
    %105 = arith.negf %81 : vector<16x128xf32>
    %106 = math.exp %105 : vector<16x128xf32>
    %cst_54 = arith.constant 1.000000e+00 : f32
    %107 = vector.broadcast %cst_54 : f32 to vector<16x128xf32>
    %108 = arith.addf %107, %106 : vector<16x128xf32>
    %109 = arith.divf %107, %108 : vector<16x128xf32>
    %cst_55 = arith.constant 0.000000e+00 : f32
    %110 = vector.broadcast %cst_55 : f32 to vector<16x128xf32>
    %111 = arith.maximumf %81, %110 : vector<16x128xf32>
    %cst_56 = arith.constant 1.000000e+02 : f32
    %112 = vector.broadcast %cst_56 : f32 to vector<16x128xf32>
    %113 = arith.mulf %111, %112 : vector<16x128xf32>
    %114 = vector.broadcast %86 : vector<1x128xf32> to vector<16x128xf32>
    %115 = arith.mulf %114, %109 : vector<16x128xf32>
    %116 = vector.broadcast %82 : vector<1x128xf32> to vector<16x128xf32>
    %117 = arith.mulf %116, %113 : vector<16x128xf32>
    %118 = arith.addf %115, %117 : vector<16x128xf32>
    %119 = vector.broadcast %83 : vector<1x128xf32> to vector<16x128xf32>
    %120 = arith.mulf %119, %104 : vector<16x128xf32>
    %121 = arith.addf %118, %120 : vector<16x128xf32>
    %c0_57 = arith.constant 0 : index
    %c0_58 = arith.constant 0 : index
    %122 = vector.load %arg19[%c0_57, %c0_58] : memref<16x128xf32, #tpu.memory_space<vmem>>, vector<16x128xf32>
    tpu.vector_store %arg19[%c0_57, %c0_58], %121 {strides = array<i32>} : memref<16x128xf32, #tpu.memory_space<vmem>>, vector<16x128xf32>,
    return
  }
  func.func @transform_0(%arg0: i32) -> (i32, i32) {
    %c0_i32 = arith.constant 0 : i32
    %c0_i32_0 = arith.constant 0 : i32
    return %arg0, %c0_i32 : i32, i32
  }
  func.func @transform_1(%arg0: i32) -> (i32, i32) {
    %c0_i32 = arith.constant 0 : i32
    %c0_i32_0 = arith.constant 0 : i32
    %c0_i32_1 = arith.constant 0 : i32
    return %c0_i32, %c0_i32_0 : i32, i32
  }
  func.func @transform_2(%arg0: i32) -> (i32, i32) {
    %c0_i32 = arith.constant 0 : i32
    %c0_i32_0 = arith.constant 0 : i32
    %c0_i32_1 = arith.constant 0 : i32
    return %c0_i32, %c0_i32_0 : i32, i32
  }
  func.func @transform_3(%arg0: i32) -> (i32, i32) {
    %c0_i32 = arith.constant 0 : i32
    %c0_i32_0 = arith.constant 0 : i32
    %c0_i32_1 = arith.constant 0 : i32
    return %c0_i32, %c0_i32_0 : i32, i32
  }
  func.func @transform_4(%arg0: i32) -> (i32, i32) {
    %c0_i32 = arith.constant 0 : i32
    %c0_i32_0 = arith.constant 0 : i32
    %c0_i32_1 = arith.constant 0 : i32
    return %c0_i32, %c0_i32_0 : i32, i32
  }
  func.func @transform_5(%arg0: i32) -> (i32, i32) {
    %c0_i32 = arith.constant 0 : i32
    %c0_i32_0 = arith.constant 0 : i32
    %c0_i32_1 = arith.constant 0 : i32
    return %c0_i32, %c0_i32_0 : i32, i32
  }
  func.func @transform_6(%arg0: i32) -> (i32, i32) {
    %c0_i32 = arith.constant 0 : i32
    %c0_i32_0 = arith.constant 0 : i32
    %c0_i32_1 = arith.constant 0 : i32
    return %c0_i32, %c0_i32_0 : i32, i32
  }
  func.func @transform_7(%arg0: i32) -> (i32, i32) {
    %c0_i32 = arith.constant 0 : i32
    %c0_i32_0 = arith.constant 0 : i32
    %c0_i32_1 = arith.constant 0 : i32
    return %c0_i32, %c0_i32_0 : i32, i32
  }
  func.func @transform_8(%arg0: i32) -> (i32, i32) {
    %c0_i32 = arith.constant 0 : i32
    %c0_i32_0 = arith.constant 0 : i32
    %c0_i32_1 = arith.constant 0 : i32
    return %c0_i32, %c0_i32_0 : i32, i32
  }
  func.func @transform_9(%arg0: i32) -> (i32, i32) {
    %c0_i32 = arith.constant 0 : i32
    %c0_i32_0 = arith.constant 0 : i32
    %c0_i32_1 = arith.constant 0 : i32
    return %c0_i32, %c0_i32_0 : i32, i32
  }
  func.func @transform_10(%arg0: i32) -> (i32, i32) {
    %c0_i32 = arith.constant 0 : i32
    %c0_i32_0 = arith.constant 0 : i32
    %c0_i32_1 = arith.constant 0 : i32
    return %c0_i32, %c0_i32_0 : i32, i32
  }
  func.func @transform_11(%arg0: i32) -> (i32, i32) {
    %c0_i32 = arith.constant 0 : i32
    %c0_i32_0 = arith.constant 0 : i32
    %c0_i32_1 = arith.constant 0 : i32
    return %c0_i32, %c0_i32_0 : i32, i32
  }
  func.func @transform_12(%arg0: i32) -> (i32, i32) {
    %c0_i32 = arith.constant 0 : i32
    %c0_i32_0 = arith.constant 0 : i32
    %c0_i32_1 = arith.constant 0 : i32
    return %c0_i32, %c0_i32_0 : i32, i32
  }
  func.func @transform_13(%arg0: i32) -> (i32, i32) {
    %c0_i32 = arith.constant 0 : i32
    %c0_i32_0 = arith.constant 0 : i32
    %c0_i32_1 = arith.constant 0 : i32
    return %c0_i32, %c0_i32_0 : i32, i32
  }
  func.func @transform_14(%arg0: i32) -> (i32, i32) {
    %c0_i32 = arith.constant 0 : i32
    %c0_i32_0 = arith.constant 0 : i32
    %c0_i32_1 = arith.constant 0 : i32
    return %c0_i32, %c0_i32_0 : i32, i32
  }
  func.func @transform_15(%arg0: i32) -> (i32, i32) {
    %c0_i32 = arith.constant 0 : i32
    %c0_i32_0 = arith.constant 0 : i32
    %c0_i32_1 = arith.constant 0 : i32
    return %c0_i32, %c0_i32_0 : i32, i32
  }
  func.func @transform_16(%arg0: i32) -> (i32, i32) {
    %c0_i32 = arith.constant 0 : i32
    %c0_i32_0 = arith.constant 0 : i32
    %c0_i32_1 = arith.constant 0 : i32
    return %c0_i32, %c0_i32_0 : i32, i32
  }
  func.func @transform_17(%arg0: i32) -> (i32, i32) {
    %c0_i32 = arith.constant 0 : i32
    %c0_i32_0 = arith.constant 0 : i32
    %c0_i32_1 = arith.constant 0 : i32
    return %c0_i32, %c0_i32_0 : i32, i32
  }
  func.func @transform_18(%arg0: i32) -> (i32, i32) {
    %c0_i32 = arith.constant 0 : i32
    %c0_i32_0 = arith.constant 0 : i32
    return %arg0, %c0_i32 : i32, i32
  }
}

</mosaic_0001>

<bundles_post_ra>
// kernel: ppn_forward_raw.1
= control target key start
LH: loop header
LB: loop body
LE: loop exit
PB: predicated region body
PF: predicated region fallthrough
CT: control target
= control target key end

     0   :  { %s3659_s0 = inlined_call_operand.vmem [shape: bf16[16,200], index: 0, kind: input, shape index: {}]   ;;  %s3660_s1 = inlined_call_operand.hbm [shape: bf16[200,512], index: 1, kind: input, shape index: {}]   ;;  %s3661_s2 = inlined_call_operand.vmem [shape: f32[1,512], index: 2, kind: input, shape index: {}]   ;;  %s3662_s3 = inlined_call_operand.hbm [shape: bf16[512,256], index: 3, kind: input, shape index: {}]   ;;  %s3663_s4 = inlined_call_operand.vmem [shape: f32[1,256], index: 4, kind: input, shape index: {}]   ;;  %s3664_s5 = inlined_call_operand.hbm [shape: bf16[256,128], index: 5, kind: input, shape index: {}]   ;;  %s3665_s6 = inlined_call_operand.vmem [shape: f32[1,128], index: 6, kind: input, shape index: {}]   ;;  %s3666_s7 = inlined_call_operand.hbm [shape: bf16[128,384], index: 7, kind: input, shape index: {}]   ;;  %s3667_s8 = inlined_call_operand.vmem [shape: f32[1,384], index: 8, kind: input, shape index: {}]   ;;  %s3668_s9 = inlined_call_operand.vmem [shape: f32[1,128], index: 9, kind: input, shape index: {}]   ;;  %s3669_s10 = inlined_call_operand.hbm [shape: bf16[128,384], index: 10, kind: input, shape index: {}]   ;;  %s3670_s11 = inlined_call_operand.vmem [shape: f32[1,384], index: 11, kind: input, shape index: {}]   ;;  %s3671_s12 = inlined_call_operand.vmem [shape: f32[1,128], index: 12, kind: input, shape index: {}]   ;;  %s3672_s13 = inlined_call_operand.hbm [shape: bf16[128,128], index: 13, kind: input, shape index: {}]   ;;  %s3673_s14 = inlined_call_operand.vmem [shape: f32[1,128], index: 14, kind: input, shape index: {}]   ;;  %s3674_s15 = inlined_call_operand.vmem [shape: f32[1,128], index: 15, kind: input, shape index: {}]   ;;  %s3675_s16 = inlined_call_operand.vmem [shape: f32[1,128], index: 16, kind: input, shape index: {}]   ;;  %s3676_s17 = inlined_call_operand.hbm [shape: f32[128,128], index: 17, kind: input, shape index: {}]   ;;  %s3677_s18 = inlined_call_operand.vmem [shape: f32[16,128], index: 18, kind: output, shape index: {}]  }
   0x1   :  { %3683 = sst [smem:[#allocation17_spill]] %s3659_s0 }
   0x2   :  { %3684 = sst [smem:[#allocation18_spill]] %s3660_s1 }
   0x3   :  { %3685 = sst [smem:[#allocation19_spill]] %s3661_s2 }
   0x4   :  { %23 = vsyncpa [#allocation3], 0 }
   0x5   :  { %24 = vsyncpa [#allocation5], 0 }
   0x6   :  { %25 = vsyncpa [#allocation8], 0  ;;  %s48_s29 = sshll.u32 %s3662_s3, 4  ;;  %s49_s29 = int_to_ptr.hbm [resolvable:$true] %s48_s29 }
   0x7   :  { %26 = vsyncpa [#allocation11], 0  ;;  %s3345_s30 = smov [#allocation4]   ;;  %s78_s20 = sshll.u32 %s3666_s7, 4  ;;  %s79_s20 = int_to_ptr.hbm [resolvable:$true] %s78_s20 }
   0x8   :  { %s50_s0 = sshll.u32 %s3345_s30, 4  ;;  %s3679_s21 = smov 128   ;;  %s51_s0 = int_to_ptr.vmem [resolvable:$true] %s50_s0 }
   0x9   :  { %s3680_s22 = smov 8   ;;  %s3348_s2 = smov [#allocation7]  }
   0xa   :  { %56 = dma.hbm_to_vmem [thread:$0]  %s49_s29, 8192, %s51_s0, [#allocation5], %s3679_s21, %s3679_s21, %s3680_s22  }
   0xb   :  { %s80_s23 = sshll.u32 %s3348_s2, 4  ;;  %s3681_s3 = smov 192   ;;  %s81_s23 = int_to_ptr.vmem [resolvable:$true] %s80_s23 }
   0xc   :  { %s3682_s24 = smov 12   ;;  %s112_s7 = sshll.u32 %s3672_s13, 4  ;;  %s113_s7 = int_to_ptr.hbm [resolvable:$true] %s112_s7 }
   0xd   :  { %86 = dma.hbm_to_vmem [thread:$0]  %s79_s20, 3072, %s81_s23, [#allocation8], %s3681_s3, %s3681_s3, %s3682_s24  }
   0xe   :  { %s3351_s27 = smov [#allocation10]   ;;  %s3686_s0 = sld [smem:[#allocation18_spill]] }
   0xf   :  { %s114_s28 = sshll.u32 %s3351_s27, 4  ;;  %s3352_s1 = smov 64   ;;  %s115_s28 = int_to_ptr.vmem [resolvable:$true] %s114_s28 }
  0x10   :  { %s3353_s2 = smov 4   ;;  %s3354_s21 = smov [#allocation2]  }
  0x11   :  { %120 = dma.hbm_to_vmem [thread:$0]  %s113_s7, 1024, %s115_s28, [#allocation11], %s3352_s1, %s3352_s1, %s3353_s2  }
  0x12   :  { %s35_s22 = sshll.u32 %s3354_s21, 4  ;;  %s3355_s20 = smov 256   ;;  %s36_s22 = int_to_ptr.vmem [resolvable:$true] %s35_s22 }
  0x13   :  { %s3356_s23 = smov 16   ;;  %s63_s26 = sshll.u32 %s3664_s5, 4  ;;  %s64_s26 = int_to_ptr.hbm [resolvable:$true] %s63_s26 }
  0x14   :  { %s33_s19 = sshll.u32 %s3686_s0, 4  ;;  %s3357_s27 = smov [#allocation6]   ;;  %s34_s19 = int_to_ptr.hbm [resolvable:$true] %s33_s19 }
  0x15   :  { %41 = dma.hbm_to_vmem [thread:$0]  %s34_s19, 6400, %s36_s22, [#allocation3], %s3355_s20, %s3355_s20, %s3356_s23  }
  0x16   :  { %s65_s3 = sshll.u32 %s3357_s27, 4  ;;  %s95_s0 = sshll.u32 %s3669_s10, 4  ;;  %s66_s3 = int_to_ptr.vmem [resolvable:$true] %s65_s3  ;;  %s96_s0 = int_to_ptr.hbm [resolvable:$true] %s95_s0 }
  0x17   :  { %71 = dma.hbm_to_vmem [thread:$0]  %s64_s26, 2048, %s66_s3, [#allocation5], %s3352_s1, %s3352_s1, %s3353_s2  }
  0x18   :  { %s3358_s7 = smov [#allocation9]   ;;  %s131_s22 = sshll.u32 %s3676_s17, 4  ;;  %s132_s22 = int_to_ptr.hbm [resolvable:$true] %s131_s22 }
  0x19   :  { %s97_s21 = sshll.u32 %s3358_s7, 4  ;;  %s3687_s19 = smov 12   ;;  %s98_s21 = int_to_ptr.vmem [resolvable:$true] %s97_s21 }
  0x1a   :  { %s3688_s20 = smov 192   ;;  %s3359_s5 = smov [#allocation12]  }
  0x1b   :  { %103 = dma.hbm_to_vmem [thread:$0]  %s96_s0, 3072, %s98_s21, [#allocation8], %s3688_s20, %s3688_s20, %s3687_s19  }
  0x1c   :  { %s133_s23 = sshll.u32 %s3359_s5, 4  ;;  %s3689_s25 = smov 8   ;;  %s134_s23 = int_to_ptr.vmem [resolvable:$true] %s133_s23 }
  0x1d   :  { %s3690_s13 = smov 128  }
  0x1e   :  { %139 = dma.hbm_to_vmem [thread:$0]  %s132_s22, 2048, %s134_s23, [#allocation11], %s3690_s13, %s3690_s13, %s3689_s25  }
  0x1f   :  { %3337 = dma.done.wait [#allocation3], 6400  }
  0x20   :  { %3338 = vsyncadd [#allocation3], 4294960896 }
  0x21   :  { %3339 = dma.done.wait [#allocation5], 10240  }
  0x22   :  { %3340 = vsyncadd [#allocation5], 4294957056 }
  0x23   :  { %3341 = dma.done.wait [#allocation8], 6144  }
  0x24   :  { %3342 = vsyncadd [#allocation8], 4294961152 }
  0x25   :  { %3343 = dma.done.wait [#allocation11], 3072  }
  0x26   :  { %3344 = vsyncadd [#allocation11], 4294964224  ;;  %v2270_v0 = vld [vmem:[#allocation2 + $0xe0] sm:$0xf]  ;;  %v2938_v1 = vld [vmem:[#allocation2 + $0xec] sm:$0xf0] }
  0x27   :  { %v219_v2 = vld [vmem:[#allocation2 + $0x180] sm:$0xff]  ;;  %v2271_v3 = vor.u32 %v2938_v1, %v2270_v0  ;;  %v2934_v7 = vld [vmem:[#allocation2 + $0xcc] sm:$0xf0]  ;;  %vm494_vm0 = vcmask 1043456   ;;  %v2336_v14 = vld [vmem:[#allocation2 + $0x170] sm:$0xf0] }
  0x28   :  { %v386_v4 = vunpack.c.l.b16 %v219_v2  ;;  %v387_v5 = vunpack.c.h.b16 %v219_v2  ;;  %v2254_v6 = vld [vmem:[#allocation2 + $0xc0] sm:$0xf]  ;;  %v2954_v12 = vld [vmem:[#allocation2 + $0x16c] sm:$0xf0]  ;;  %v2952_v13 = vld [vmem:[#allocation2 + $0x164] sm:$0xf] }
  0x29   :  { %v2334_v8 = vld [vmem:[#allocation2 + $0x160] sm:$0xf]  ;;  %507 = vmatpush.bf16.msra.mxu0 %v2271_v3  ;;  %v2255_v11 = vor.u32 %v2934_v7, %v2254_v6  ;;  %v2930_v16 = vld [vmem:[#allocation2 + $0xac] sm:$0xf0]  ;;  %v2339_v20 = vor.u32 %v2952_v13, %v2336_v14  ;;  %v2278_v22 = vld [vmem:[#allocation2 + $0xe8] sm:$0xf] }
  0x2a   :  { %v438_v9 = vpack.c.b16 %v386_v4, %v386_v4  ;;  %v439_v10 = vpack.c.b16 %v387_v5, %v387_v5  ;;  %v2238_v15 = vld [vmem:[#allocation2 + $0xa0] sm:$0xf]  ;;  %v2335_v19 = vor.u32 %v2954_v12, %v2334_v8  ;;  %v2939_v23 = vld [vmem:[#allocation2 + $0xf4] sm:$0xf0]  ;;  %v2950_v25 = vld [vmem:[#allocation2 + $0x14c] sm:$0xf0] }
  0x2b   :  { %v2318_v21 = vld [vmem:[#allocation2 + $0x140] sm:$0xf]  ;;  %v2239_v24 = vor.u32 %v2930_v16, %v2238_v15  ;;  %v2948_v26 = vld [vmem:[#allocation2 + $0x144] sm:$0xf]  ;;  %v2320_v27 = vld [vmem:[#allocation2 + $0x150] sm:$0xf0]  ;;  %v2279_v28 = vor.u32 %v2939_v23, %v2278_v22 }
  0x2c   :  { %v496_v17 = vsel %vm494_vm0, %v438_v9, 0  ;;  %v499_v18 = vsel %vm494_vm0, %v439_v10, 0  ;;  %v2222_v29 = vld [vmem:[#allocation2 + $0x80] sm:$0xf]  ;;  %v2926_v30 = vld [vmem:[#allocation2 + $0x8c] sm:$0xf0]  ;;  %v2319_v33 = vor.u32 %v2950_v25, %v2318_v21  ;;  %v2323_v34 = vor.u32 %v2948_v26, %v2320_v27 }
  0x2d   :  { %524 = vmatpush.bf16.msra.mxu2 %v496_v17  ;;  %552 = vmatpush.bf16.msra.mxu3 %v499_v18  ;;  %v2262_v31 = vld [vmem:[#allocation2 + $0xc8] sm:$0xf]  ;;  %v2935_v32 = vld [vmem:[#allocation2 + $0xd4] sm:$0xf0]  ;;  %v2302_v35 = vld [vmem:[#allocation2 + $0x120] sm:$0xf]  ;;  %v2223_v39 = vor.u32 %v2926_v30, %v2222_v29 }
  0x2e   :  { %508 = vmatpush.bf16.msra.mxu0 %v2255_v11  ;;  %563 = vmatpush.bf16.msra.mxu1 %v2279_v28  ;;  %v2946_v36 = vld [vmem:[#allocation2 + $0x12c] sm:$0xf0]  ;;  %v2944_v37 = vld [vmem:[#allocation2 + $0x124] sm:$0xf]  ;;  %v2263_v38 = vor.u32 %v2935_v32, %v2262_v31  ;;  %v2304_v40 = vld [vmem:[#allocation2 + $0x130] sm:$0xf0] }
  0x2f   :  { %v2206_v41 = vld [vmem:[#allocation2 + $0x60] sm:$0xf]  ;;  %v2922_v42 = vld [vmem:[#allocation2 + $0x6c] sm:$0xf0]  ;;  %v2246_v43 = vld [vmem:[#allocation2 + $0xa8] sm:$0xf]  ;;  %v2303_v49 = vor.u32 %v2946_v36, %v2302_v35  ;;  %v2307_v50 = vor.u32 %v2944_v37, %v2304_v40 }
  0x30   :  { %v2931_v44 = vld [vmem:[#allocation2 + $0xb4] sm:$0xf0]  ;;  %v3490_v45 = vld [vmem:[#allocation2 + $0x188] sm:$0xff]  ;;  %v2286_v46 = vld [vmem:[#allocation2 + $0x100] sm:$0xf]  ;;  %v2207_v54 = vor.u32 %v2922_v42, %v2206_v41  ;;  %s3691_s3 = sld [smem:[#allocation17_spill]] }
  0x31   :  { %525 = vmatpush.bf16.msra.mxu2 %v2335_v19  ;;  %553 = vmatpush.bf16.msra.mxu3 %v2339_v20  ;;  %v2247_v47 = vor.u32 %v2931_v44, %v2246_v43  ;;  %v388_v48 = vunpack.c.l.b16 %v3490_v45  ;;  %v2942_v51 = vld [vmem:[#allocation2 + $0x10c] sm:$0xf0]  ;;  %v2940_v52 = vld [vmem:[#allocation2 + $0x104] sm:$0xf]  ;;  %v2288_v53 = vld [vmem:[#allocation2 + $0x110] sm:$0xf0] }
  0x32   :  { %509 = vmatpush.bf16.msra.mxu0 %v2239_v24  ;;  %564 = vmatpush.bf16.msra.mxu1 %v2263_v38  ;;  %v2190_v55 = vld [vmem:[#allocation2 + $0x40] sm:$0xf]  ;;  %v2230_v56 = vld [vmem:[#allocation2 + $0x88] sm:$0xf]  ;;  %v2927_v57 = vld [vmem:[#allocation2 + $0x94] sm:$0xf0]  ;;  %v2287_v63 = vor.u32 %v2942_v51, %v2286_v46  ;;  %v2291_v0 = vor.u32 %v2940_v52, %v2288_v53 }
  0x33   :  { %v2918_v58 = vld [vmem:[#allocation2 + $0x4c] sm:$0xf0]  ;;  %v2936_v59 = vld [vmem:[#allocation2 + $0xe4] sm:$0xf]  ;;  %v2272_v60 = vld [vmem:[#allocation2 + $0xf0] sm:$0xf0]  ;;  %v440_v61 = vpack.c.b16 %v388_v48, %v388_v48  ;;  %v2231_v62 = vor.u32 %v2927_v57, %v2230_v56 }
  0x34   :  { %v2191_v3 = vor.u32 %v2918_v58, %v2190_v55  ;;  %v2275_v4 = vor.u32 %v2936_v59, %v2272_v60  ;;  %v2174_v5 = vld [vmem:[#allocation2 + $0x20] sm:$0xf]  ;;  %v2214_v6 = vld [vmem:[#allocation2 + $0x68] sm:$0xf]  ;;  %v2923_v7 = vld [vmem:[#allocation2 + $0x74] sm:$0xf0] }
  0x35   :  { %526 = vmatpush.bf16.msra.mxu2 %v2319_v33  ;;  %554 = vmatpush.bf16.msra.mxu3 %v2323_v34  ;;  %v2914_v8 = vld [vmem:[#allocation2 + $0x2c] sm:$0xf0]  ;;  %v2932_v9 = vld [vmem:[#allocation2 + $0xc4] sm:$0xf]  ;;  %v2256_v10 = vld [vmem:[#allocation2 + $0xd0] sm:$0xf0]  ;;  %v2215_v16 = vor.u32 %v2923_v7, %v2214_v6  ;;  %v389_v6 = vunpack.c.h.b16 %v3490_v45 }
  0x36   :  { %510 = vmatpush.bf16.msra.mxu0 %v2223_v39  ;;  %565 = vmatpush.bf16.msra.mxu1 %v2247_v47  ;;  %v2906_v1 = vld [vmem:[%s3691_s3 + $0x4] sm:$0xf]  ;;  %v2152_v2 = vld [vmem:[%s3691_s3 + $0x8] sm:$0xf0]  ;;  %v502_v11 = vsel %vm494_vm0, %v440_v61, 0  ;;  %vm490_vm1 = vcmask 588800   ;;  %v2175_v17 = vor.u32 %v2914_v8, %v2174_v5  ;;  %v2259_v18 = vor.u32 %v2932_v9, %v2256_v10 }
  0x37   :  { %v3500_v12 = vor.u32 %v2906_v1, %v2152_v2  ;;  %v2342_v13 = vld [vmem:[#allocation2 + $0x168] sm:$0xf]  ;;  %v2955_v14 = vld [vmem:[#allocation2 + $0x174] sm:$0xf0]  ;;  %v2158_v15 = vld [vmem:[#allocation2] sm:$0xf] }
  0x38   :  { %v2910_v19 = vld [vmem:[#allocation2 + $0xc] sm:$0xf0]  ;;  %v2198_v20 = vld [vmem:[#allocation2 + $0x48] sm:$0xf]  ;;  %v2919_v21 = vld [vmem:[#allocation2 + $0x54] sm:$0xf0]  ;;  %v2343_v22 = vor.u32 %v2955_v14, %v2342_v13 }
  0x39   :  { %527 = vmatpush.bf16.msra.mxu2 %v2303_v49  ;;  %555 = vmatpush.bf16.msra.mxu3 %v2307_v50  ;;  %v2928_v23 = vld [vmem:[#allocation2 + $0xa4] sm:$0xf]  ;;  %v2240_v24 = vld [vmem:[#allocation2 + $0xb0] sm:$0xf0]  ;;  %v2326_v25 = vld [vmem:[#allocation2 + $0x148] sm:$0xf]  ;;  %v2199_v30 = vor.u32 %v2919_v21, %v2198_v20  ;;  %v2159_v31 = vor.u32 %v2910_v19, %v2158_v15  ;;  %v441_v21 = vpack.c.b16 %v389_v6, %v389_v6 }
  0x3a   :  { %511 = vmatpush.bf16.msra.mxu0 %v2207_v54  ;;  %566 = vmatpush.bf16.msra.mxu1 %v2231_v62  ;;  %v2951_v26 = vld [vmem:[#allocation2 + $0x154] sm:$0xf0]  ;;  %v2937_v27 = vld [vmem:[#allocation2 + $0xec] sm:$0xf]  ;;  %v2280_v28 = vld [vmem:[#allocation2 + $0xf8] sm:$0xf0]  ;;  %v2243_v32 = vor.u32 %v2928_v23, %v2240_v24 }
  0x3b   :  { %v2150_v29 = vld [vmem:[%s3691_s3] sm:$0xf]  ;;  %v2907_v33 = vld [vmem:[%s3691_s3 + $0x4] sm:$0xf0]  ;;  %v2915_v35 = vld [vmem:[#allocation2 + $0x34] sm:$0xf0]  ;;  %v2327_v36 = vor.u32 %v2951_v26, %v2326_v25  ;;  %v2283_v40 = vor.u32 %v2937_v27, %v2280_v28 }
  0x3c   :  { %v2182_v34 = vld [vmem:[#allocation2 + $0x28] sm:$0xf]  ;;  %v2924_v37 = vld [vmem:[#allocation2 + $0x84] sm:$0xf]  ;;  %v2224_v38 = vld [vmem:[#allocation2 + $0x90] sm:$0xf0]  ;;  %v3512_v44 = vor.u32 %v2907_v33, %v2150_v29 }
  0x3d   :  { %528 = vmatpush.bf16.msra.mxu2 %v2287_v63  ;;  %556 = vmatpush.bf16.msra.mxu3 %v2291_v0  ;;  %v2310_v39 = vld [vmem:[#allocation2 + $0x128] sm:$0xf]  ;;  %v2947_v41 = vld [vmem:[#allocation2 + $0x134] sm:$0xf0]  ;;  %v2933_v42 = vld [vmem:[#allocation2 + $0xcc] sm:$0xf]  ;;  %v2183_v46 = vor.u32 %v2915_v35, %v2182_v34  ;;  %v2227_v47 = vor.u32 %v2924_v37, %v2224_v38 }
  0x3e   :  { %512 = vmatpush.bf16.msra.mxu0 %v2191_v3  ;;  %567 = vmatpush.bf16.msra.mxu1 %v2215_v16  ;;  %v2264_v43 = vld [vmem:[#allocation2 + $0xd8] sm:$0xf0]  ;;  %v2166_v48 = vld [vmem:[#allocation2 + $0x8] sm:$0xf]  ;;  %v2911_v49 = vld [vmem:[#allocation2 + $0x14] sm:$0xf0]  ;;  %v2311_v50 = vor.u32 %v2947_v41, %v2310_v39 }
  0x3f   :  { %v2920_v51 = vld [vmem:[#allocation2 + $0x64] sm:$0xf]  ;;  %v2208_v52 = vld [vmem:[#allocation2 + $0x70] sm:$0xf0]  ;;  %v2294_v53 = vld [vmem:[#allocation2 + $0x108] sm:$0xf]  ;;  %v2267_v54 = vor.u32 %v2933_v42, %v2264_v43  ;;  %v2167_v58 = vor.u32 %v2911_v49, %v2166_v48 }
  0x40   :  { %2349 = vmatmul.msk.bf16.vlgmr.msra.gmra.mxu3 %vm490_vm1, %v3500_v12  ;;  %2348 = vmatmul.msk.bf16.vlgmr.msra.gmra.mxu2 %vm490_vm1, %v3500_v12  ;;  %v2943_v55 = vld [vmem:[#allocation2 + $0x114] sm:$0xf0]  ;;  %v2929_v56 = vld [vmem:[#allocation2 + $0xac] sm:$0xf]  ;;  %v2248_v57 = vld [vmem:[#allocation2 + $0xb8] sm:$0xf0]  ;;  %v2211_v59 = vor.u32 %v2920_v51, %v2208_v52 }
  0x41   :  { %535 = vmatpush.bf16.msrb.mxu2 %v2275_v4  ;;  %580 = vmatpush.bf16.msrb.mxu3 %v502_v11  ;;  %v2295_v60 = vor.u32 %v2943_v55, %v2294_v53  ;;  %v2916_v61 = vld [vmem:[#allocation2 + $0x44] sm:$0xf]  ;;  %v2192_v62 = vld [vmem:[#allocation2 + $0x50] sm:$0xf0]  ;;  %v2251_v63 = vor.u32 %v2929_v56, %v2248_v57  ;;  %v2925_v0 = vld [vmem:[#allocation2 + $0x8c] sm:$0xf] }
  0x42   :  { %513 = vmatpush.bf16.msra.mxu0 %v2175_v17  ;;  %568 = vmatpush.bf16.msra.mxu1 %v2199_v30  ;;  %v2232_v1 = vld [vmem:[#allocation2 + $0x98] sm:$0xf0]  ;;  %v2195_v2 = vor.u32 %v2916_v61, %v2192_v62  ;;  %v2410_v3 = vld [vmem:[#allocation4 + $0x70] sm:$0xf]  ;;  %v2971_v4 = vld [vmem:[#allocation4 + $0x74] sm:$0xf0] }
  0x43   :  { %v2402_v5 = vld [vmem:[#allocation4 + $0x60] sm:$0xf]  ;;  %v2912_v7 = vld [vmem:[#allocation2 + $0x24] sm:$0xf]  ;;  %v2176_v8 = vld [vmem:[#allocation2 + $0x30] sm:$0xf0]  ;;  %v2235_v9 = vor.u32 %v2925_v0, %v2232_v1  ;;  %v2411_v10 = vor.u32 %v2971_v4, %v2410_v3 }
  0x44   :  { %v2969_v11 = vld [vmem:[#allocation4 + $0x64] sm:$0xf0]  ;;  %v2921_v13 = vld [vmem:[#allocation2 + $0x6c] sm:$0xf]  ;;  %v2216_v14 = vld [vmem:[#allocation2 + $0x78] sm:$0xf0]  ;;  %v2179_v16 = vor.u32 %v2912_v7, %v2176_v8 }
  0x45   :  { %536 = vmatpush.bf16.msrb.mxu2 %v2259_v18  ;;  %581 = vmatpush.bf16.msrb.mxu3 %v2343_v22  ;;  %v2403_v15 = vor.u32 %v2969_v11, %v2402_v5  ;;  %v2394_v17 = vld [vmem:[#allocation4 + $0x50] sm:$0xf]  ;;  %v2967_v45 = vld [vmem:[#allocation4 + $0x54] sm:$0xf0]  ;;  %v2908_v18 = vld [vmem:[#allocation2 + $0x4] sm:$0xf]  ;;  %v2219_v20 = vor.u32 %v2921_v13, %v2216_v14 }
  0x46   :  { %514 = vmatpush.bf16.msra.mxu0 %v2159_v31  ;;  %569 = vmatpush.bf16.msra.mxu1 %v2183_v46  ;;  %v2160_v19 = vld [vmem:[#allocation2 + $0x10] sm:$0xf0]  ;;  %v2917_v22 = vld [vmem:[#allocation2 + $0x4c] sm:$0xf]  ;;  %v2200_v23 = vld [vmem:[#allocation2 + $0x58] sm:$0xf0]  ;;  %v2395_v24 = vor.u32 %v2967_v45, %v2394_v17 }
  0x47   :  { %v2163_v25 = vor.u32 %v2908_v18, %v2160_v19  ;;  %v2386_v26 = vld [vmem:[#allocation4 + $0x40] sm:$0xf]  ;;  %v2965_v27 = vld [vmem:[#allocation4 + $0x44] sm:$0xf0]  ;;  %v505_v28 = vsel %vm494_vm0, %v441_v21, 0  ;;  %v2203_v29 = vor.u32 %v2917_v22, %v2200_v23  ;;  %s3692_s7 = sld [smem:[#allocation19_spill]] }
  0x48   :  { %v2953_v30 = vld [vmem:[#allocation2 + $0x16c] sm:$0xf]  ;;  %v2344_v31 = vld [vmem:[#allocation2 + $0x178] sm:$0xf0]  ;;  %v2387_v34 = vor.u32 %v2965_v27, %v2386_v26  ;;  %v2378_v35 = vld [vmem:[#allocation4 + $0x30] sm:$0xf] }
  0x49   :  { %537 = vmatpush.bf16.msrb.mxu2 %v2243_v32  ;;  %582 = vmatpush.bf16.msrb.mxu3 %v2327_v36  ;;  %v2913_v32 = vld [vmem:[#allocation2 + $0x2c] sm:$0xf]  ;;  %v2184_v33 = vld [vmem:[#allocation2 + $0x38] sm:$0xf0]  ;;  %v2963_v36 = vld [vmem:[#allocation4 + $0x34] sm:$0xf0]  ;;  %v2347_v37 = vor.u32 %v2953_v30, %v2344_v31 }
  0x4a   :  { %591 = vmatpush.bf16.msrb.mxu0 %v2283_v40  ;;  %570 = vmatpush.bf16.msra.mxu1 %v2167_v58  ;;  %v2187_v38 = vor.u32 %v2913_v32, %v2184_v33  ;;  %v2949_v39 = vld [vmem:[#allocation2 + $0x14c] sm:$0xf]  ;;  %v2328_v40 = vld [vmem:[#allocation2 + $0x158] sm:$0xf0]  ;;  %v2379_v43 = vor.u32 %v2963_v36, %v2378_v35  ;;  %v2370_v46 = vld [vmem:[#allocation4 + $0x20] sm:$0xf] }
  0x4b   :  { %515 = vmatmul.bf16.vlgmr.msra.gmra.mxu0 %v3512_v44  ;;  %v2909_v41 = vld [vmem:[#allocation2 + $0xc] sm:$0xf]  ;;  %v2168_v42 = vld [vmem:[#allocation2 + $0x18] sm:$0xf0]  ;;  %v2331_v48 = vor.u32 %v2949_v39, %v2328_v40  ;;  %v2362_v53 = vld [vmem:[#allocation4 + $0x10] sm:$0xf] }
  0x4c   :  { %v2171_v49 = vor.u32 %v2909_v41, %v2168_v42  ;;  %v2312_v51 = vld [vmem:[#allocation2 + $0x138] sm:$0xf0]  ;;  %v2941_v56 = vld [vmem:[#allocation2 + $0x10c] sm:$0xf]  ;;  %v2538_v58 = vld [vmem:[#allocation4 + $0x170] sm:$0xf] }
  0x4d   :  { %538 = vmatpush.bf16.msrb.mxu2 %v2227_v47  ;;  %583 = vmatpush.bf16.msrb.mxu3 %v2311_v50  ;;  %v2961_v47 = vld [vmem:[#allocation4 + $0x24] sm:$0xf0]  ;;  %v2945_v50 = vld [vmem:[#allocation2 + $0x12c] sm:$0xf]  ;;  %v2296_v57 = vld [vmem:[#allocation2 + $0x118] sm:$0xf0] }
  0x4e   :  { %592 = vmatpush.bf16.msrb.mxu0 %v2267_v54  ;;  %571 = vmatmul.bf16.vlgmr.msra.gmra.mxu1 %v3512_v44  ;;  %v2371_v52 = vor.u32 %v2961_v47, %v2370_v46  ;;  %v2959_v54 = vld [vmem:[#allocation4 + $0x14] sm:$0xf0]  ;;  %v2315_v55 = vor.u32 %v2945_v50, %v2312_v51  ;;  %v2299_v61 = vor.u32 %v2941_v56, %v2296_v57  ;;  %v3001_v0 = vld [vmem:[#allocation4 + $0x164] sm:$0xf0]  ;;  %v2514_v5 = vld [vmem:[#allocation4 + $0x140] sm:$0xf] }
  0x4f   :  { %v2999_v3 = vld [vmem:[#allocation4 + $0x154] sm:$0xf0]  ;;  %v2997_v6 = vld [vmem:[#allocation4 + $0x144] sm:$0xf0]  ;;  %v2474_v7 = vld [vmem:[#allocation4 + $0xf0] sm:$0xf] }
  0x50   :  { %v2987_v8 = vld [vmem:[#allocation4 + $0xf4] sm:$0xf0]  ;;  %v2957_v11 = vld [vmem:[#allocation4 + $0x4] sm:$0xf0]  ;;  %v2506_v13 = vld [vmem:[#allocation4 + $0x130] sm:$0xf] }
  0x51   :  { %539 = vmatpush.bf16.msrb.mxu2 %v2211_v59  ;;  %584 = vmatpush.bf16.msrb.mxu3 %v2295_v60  ;;  %v3003_v59 = vld [vmem:[#allocation4 + $0x174] sm:$0xf0]  ;;  %v2363_v60 = vor.u32 %v2959_v54, %v2362_v53  ;;  %v2412_v17 = vld [vmem:[#allocation4 + $0x78] sm:$0xf0]  ;;  %v2466_v18 = vld [vmem:[#allocation4 + $0xe0] sm:$0xf] }
  0x52   :  { %593 = vmatpush.bf16.msrb.mxu0 %v2251_v63  ;;  %v2539_v62 = vor.u32 %v3003_v59, %v2538_v58  ;;  %v2530_v63 = vld [vmem:[#allocation4 + $0x160] sm:$0xf]  ;;  %v2985_v19 = vld [vmem:[#allocation4 + $0xe4] sm:$0xf0]  ;;  %v2458_v27 = vld [vmem:[#allocation4 + $0xd0] sm:$0xf] }
  0x53   :  { %v2531_v1 = vor.u32 %v3001_v0, %v2530_v63  ;;  %v2498_v21 = vld [vmem:[#allocation4 + $0x120] sm:$0xf]  ;;  %v2993_v22 = vld [vmem:[#allocation4 + $0x124] sm:$0xf0]  ;;  %v2490_v30 = vld [vmem:[#allocation4 + $0x110] sm:$0xf] }
  0x54   :  { %2350 = vmatmul.msk.bf16.vlgmr.msrb.gmra.mxu3 %vm490_vm1, %v3500_v12  ;;  %v2499_v23 = vor.u32 %v2993_v22, %v2498_v21  ;;  %v2991_v31 = vld [vmem:[#allocation4 + $0x114] sm:$0xf0]  ;;  %v2966_v33 = vld [vmem:[#allocation4 + $0x54] sm:$0xf]  ;;  %v2450_v36 = vld [vmem:[#allocation4 + $0xc0] sm:$0xf] }
  0x55   :  { %1021 = vmatpush.bf16.msra.mxu3 %v2411_v10  ;;  %540 = vmatpush.bf16.msrb.mxu2 %v2195_v2  ;;  %v2522_v2 = vld [vmem:[#allocation4 + $0x150] sm:$0xf]  ;;  %v2354_v10 = vld [vmem:[#allocation4] sm:$0xf]  ;;  %v2491_v32 = vor.u32 %v2991_v31, %v2490_v30  ;;  %v2989_v40 = vld [vmem:[#allocation4 + $0x104] sm:$0xf0] }
  0x56   :  { %594 = vmatpush.bf16.msrb.mxu0 %v2235_v9  ;;  %v2523_v4 = vor.u32 %v2999_v3, %v2522_v2  ;;  %v2475_v9 = vor.u32 %v2987_v8, %v2474_v7  ;;  %v2355_v14 = vor.u32 %v2957_v11, %v2354_v10  ;;  %v2482_v39 = vld [vmem:[#allocation4 + $0x100] sm:$0xf]  ;;  %v2602_v42 = vld [vmem:[#allocation4 + $0x1f0] sm:$0xf]  ;;  %v2964_v46 = vld [vmem:[#allocation4 + $0x44] sm:$0xf] }
  0x57   :  { %v2483_v41 = vor.u32 %v2989_v40, %v2482_v39  ;;  %v2540_v50 = vld [vmem:[#allocation4 + $0x178] sm:$0xf0]  ;;  %v2442_v53 = vld [vmem:[#allocation4 + $0xb0] sm:$0xf]  ;;  %v2979_v54 = vld [vmem:[#allocation4 + $0xb4] sm:$0xf0] }
  0x58   :  { %1035 = vmatpush.bf16.msrb.mxu1 %v2475_v9  ;;  %v2594_v56 = vld [vmem:[#allocation4 + $0x1e0] sm:$0xf]  ;;  %v3017_v57 = vld [vmem:[#allocation4 + $0x1e4] sm:$0xf0]  ;;  %v2962_v58 = vld [vmem:[#allocation4 + $0x34] sm:$0xf] }
  0x59   :  { %1022 = vmatpush.bf16.msra.mxu3 %v2403_v15  ;;  %541 = vmatpush.bf16.msrb.mxu2 %v2179_v16  ;;  %v2995_v15 = vld [vmem:[#allocation4 + $0x134] sm:$0xf0]  ;;  %v2970_v16 = vld [vmem:[#allocation4 + $0x74] sm:$0xf]  ;;  %v2595_v59 = vor.u32 %v3017_v57, %v2594_v56  ;;  %v2977_v2 = vld [vmem:[#allocation4 + $0xa4] sm:$0xf0] }
  0x5a   :  { %595 = vmatpush.bf16.msrb.mxu0 %v2219_v20  ;;  %v2507_v45 = vor.u32 %v2995_v15, %v2506_v13  ;;  %v2467_v20 = vor.u32 %v2985_v19, %v2466_v18  ;;  %v2372_v7 = vld [vmem:[#allocation4 + $0x28] sm:$0xf0]  ;;  %v2998_v8 = vld [vmem:[#allocation4 + $0x154] sm:$0xf]  ;;  %v2524_v9 = vld [vmem:[#allocation4 + $0x158] sm:$0xf0] }
  0x5b   :  { %v2527_v11 = vor.u32 %v2998_v8, %v2524_v9  ;;  %v2426_v13 = vld [vmem:[#allocation4 + $0x90] sm:$0xf]  ;;  %v2364_v18 = vld [vmem:[#allocation4 + $0x18] sm:$0xf0]  ;;  %v2996_v19 = vld [vmem:[#allocation4 + $0x144] sm:$0xf] }
  0x5c   :  { %1036 = vmatpush.bf16.msrb.mxu1 %v2467_v20  ;;  %v2516_v20 = vld [vmem:[#allocation4 + $0x148] sm:$0xf0]  ;;  %v2570_v30 = vld [vmem:[#allocation4 + $0x1b0] sm:$0xf]  ;;  %v3011_v31 = vld [vmem:[#allocation4 + $0x1b4] sm:$0xf0] }
  0x5d   :  { %1023 = vmatpush.bf16.msra.mxu3 %v2395_v24  ;;  %542 = vmatpush.bf16.msrb.mxu2 %v2163_v25  ;;  %v2968_v24 = vld [vmem:[#allocation4 + $0x64] sm:$0xf]  ;;  %v2404_v25 = vld [vmem:[#allocation4 + $0x68] sm:$0xf0]  ;;  %v2519_v22 = vor.u32 %v2996_v19, %v2516_v20 }
  0x5e   :  { %596 = vmatpush.bf16.msrb.mxu0 %v2203_v29  ;;  %v2407_v26 = vor.u32 %v2968_v24, %v2404_v25  ;;  %v2973_v24 = vld [vmem:[#allocation4 + $0x84] sm:$0xf0]  ;;  %v3527_v25 = vld [vmem:[%s3692_s7] sm:$0xf] }
  0x60   :  { %543 = vmatmul.bf16.vlgmr.msrb.gmra.mxu2 %v3512_v44 }
  0x61   :  { %608 = vmatpush.bf16.msra.mxu2 %v505_v28  ;;  %1024 = vmatpush.bf16.msra.mxu3 %v2387_v34  ;;  %v2983_v28 = vld [vmem:[#allocation4 + $0xd4] sm:$0xf0]  ;;  %v2396_v34 = vld [vmem:[#allocation4 + $0x58] sm:$0xf0] }
  0x62   :  { %597 = vmatpush.bf16.msrb.mxu0 %v2187_v38  ;;  %v2459_v29 = vor.u32 %v2983_v28, %v2458_v27  ;;  %v2399_v35 = vor.u32 %v2966_v33, %v2396_v34  ;;  %v2986_v27 = vld [vmem:[#allocation4 + $0xf4] sm:$0xf]  ;;  %v2476_v28 = vld [vmem:[#allocation4 + $0xf8] sm:$0xf0]  ;;  %v2571_v34 = vor.u32 %v3011_v31, %v2570_v30 }
  0x64   :  { %1037 = vmatpush.bf16.msrb.mxu1 %v2459_v29  ;;  %v2479_v29 = vor.u32 %v2986_v27, %v2476_v28  ;;  %v2976_v27 = vld [vmem:[#allocation4 + $0xa4] sm:$0xf]  ;;  %v2436_v28 = vld [vmem:[#allocation4 + $0xa8] sm:$0xf0] }
  0x65   :  { %609 = vmatpush.bf16.msra.mxu2 %v2347_v37  ;;  %1025 = vmatpush.bf16.msra.mxu3 %v2379_v43  ;;  %v2981_v37 = vld [vmem:[#allocation4 + $0xc4] sm:$0xf0]  ;;  %v3019_v43 = vld [vmem:[#allocation4 + $0x1f4] sm:$0xf0]  ;;  %v2439_v31 = vor.u32 %v2976_v27, %v2436_v28 }
  0x66   :  { %598 = vmatpush.bf16.msrb.mxu0 %v2171_v49  ;;  %v2451_v38 = vor.u32 %v2981_v37, %v2450_v36  ;;  %v2603_v47 = vor.u32 %v3019_v43, %v2602_v42  ;;  %v3002_v49 = vld [vmem:[#allocation4 + $0x174] sm:$0xf]  ;;  %v2508_v37 = vld [vmem:[#allocation4 + $0x138] sm:$0xf0]  ;;  %v2468_v42 = vld [vmem:[#allocation4 + $0xe8] sm:$0xf0] }
  0x67   :  { %v2994_v36 = vld [vmem:[#allocation4 + $0x134] sm:$0xf]  ;;  %v223_v43 = vperm.slane %v3527_v25, 0  ;;  %v3023_v27 = vld [vmem:[#allocation6 + $0x18] sm:$0xff] }
  0x68   :  { %1038 = vmatpush.bf16.msrb.mxu1 %v2451_v38  ;;  %v2511_v40 = vor.u32 %v2994_v36, %v2508_v37  ;;  %v2588_v36 = vld [vmem:[#allocation4 + $0x1d8] sm:$0xf0] }
  0x69   :  { %610 = vmatpush.bf16.msra.mxu2 %v2331_v48  ;;  %1026 = vmatpush.bf16.msra.mxu3 %v2371_v52  ;;  %v2388_v48 = vld [vmem:[#allocation4 + $0x48] sm:$0xf0]  ;;  %v2543_v52 = vor.u32 %v3002_v49, %v2540_v50  ;;  %v3009_v49 = vld [vmem:[#allocation4 + $0x1a4] sm:$0xf0]  ;;  %v2992_v50 = vld [vmem:[#allocation4 + $0x124] sm:$0xf] }
  0x6a   :  { %599 = vmatmul.bf16.vlgmr.msrb.gmra.mxu0 %v3512_v44  ;;  %v2515_v44 = vor.u32 %v2997_v6, %v2514_v5  ;;  %v2391_v51 = vor.u32 %v2964_v46, %v2388_v48  ;;  %v3015_v5 = vld [vmem:[#allocation4 + $0x1d4] sm:$0xf0]  ;;  %v2960_v6 = vld [vmem:[#allocation4 + $0x24] sm:$0xf]  ;;  %v2562_v48 = vld [vmem:[#allocation4 + $0x1a0] sm:$0xf] }
  0x6b   :  { %1063 = vmatpush.bf16.msra.mxu0 %v2603_v47  ;;  %v2375_v10 = vor.u32 %v2960_v6, %v2372_v7  ;;  %v2546_v6 = vld [vmem:[#allocation4 + $0x180] sm:$0xf]  ;;  %v2988_v7 = vld [vmem:[#allocation4 + $0x104] sm:$0xf]  ;;  %v3035_v28 = vld [vmem:[#allocation6 + $0x78] sm:$0xff] }
  0x6d   :  { %611 = vmatpush.bf16.msra.mxu2 %v2315_v55  ;;  %1027 = vmatpush.bf16.msra.mxu3 %v2363_v60  ;;  %v2443_v55 = vor.u32 %v2979_v54, %v2442_v53  ;;  %v2380_v60 = vld [vmem:[#allocation4 + $0x38] sm:$0xf0]  ;;  %v2982_v54 = vld [vmem:[#allocation4 + $0xd4] sm:$0xf] }
  0x6e   :  { %v2383_v63 = vor.u32 %v2962_v58, %v2380_v60  ;;  %v2554_v58 = vld [vmem:[#allocation4 + $0x190] sm:$0xf]  ;;  %v2990_v60 = vld [vmem:[#allocation4 + $0x114] sm:$0xf] }
  0x6f   :  { %1039 = vmatpush.bf16.msrb.mxu1 %v2443_v55  ;;  %1064 = vmatpush.bf16.msra.mxu0 %v2595_v59  ;;  %v2460_v55 = vld [vmem:[#allocation4 + $0xd8] sm:$0xf0]  ;;  %v3007_v59 = vld [vmem:[#allocation4 + $0x194] sm:$0xf0] }
  0x70   :  { %v2463_v57 = vor.u32 %v2982_v54, %v2460_v55  ;;  %v3010_v54 = vld [vmem:[#allocation4 + $0x1b4] sm:$0xf]  ;;  %v2572_v55 = vld [vmem:[#allocation4 + $0x1b8] sm:$0xf0] }
  0x71   :  { %612 = vmatpush.bf16.msra.mxu2 %v2299_v61  ;;  %1028 = vmatpush.bf16.msra.mxu3 %v2355_v14  ;;  %v3000_v61 = vld [vmem:[#allocation4 + $0x164] sm:$0xf]  ;;  %v2975_v14 = vld [vmem:[#allocation4 + $0x94] sm:$0xf0] }
  0x72   :  { %v2427_v15 = vor.u32 %v2975_v14, %v2426_v13 }
  0x74   :  { %2351 = vmatmul.msk.bf16.vlgmr.msra.gmra.mxu2 %vm490_vm1, %v3500_v12  ;;  %v2415_v12 = vor.u32 %v2970_v16, %v2412_v17  ;;  %v2578_v16 = vld [vmem:[#allocation4 + $0x1c0] sm:$0xf]  ;;  %v3013_v17 = vld [vmem:[#allocation4 + $0x1c4] sm:$0xf0] }
  0x75   :  { %1049 = vmatpush.bf16.msrb.mxu2 %v2539_v62  ;;  %v2532_v62 = vld [vmem:[#allocation4 + $0x168] sm:$0xf0] }
  0x76   :  { %1077 = vmatpush.bf16.msrb.mxu3 %v2415_v12  ;;  %v2535_v0 = vor.u32 %v3000_v61, %v2532_v62  ;;  %v2579_v12 = vor.u32 %v3013_v17, %v2578_v16  ;;  %v2555_v62 = vor.u32 %v3007_v59, %v2554_v58  ;;  %v2604_v16 = vld [vmem:[#allocation4 + $0x1f8] sm:$0xf0]  ;;  %v2575_v58 = vor.u32 %v3010_v54, %v2572_v55  ;;  %v2760_v55 = vld [vmem:[#allocation7 + $0xb4] sm:$0xf0] }
  0x77   :  { %v224_v59 = vperm.slane %v3527_v25, 1 }
  0x79   :  { %1050 = vmatpush.bf16.msrb.mxu2 %v2531_v1  ;;  %v2434_v1 = vld [vmem:[#allocation4 + $0xa0] sm:$0xf] }
  0x7a   :  { %1078 = vmatpush.bf16.msrb.mxu3 %v2407_v26  ;;  %v2435_v3 = vor.u32 %v2977_v2, %v2434_v1  ;;  %v2980_v1 = vld [vmem:[#allocation4 + $0xc4] sm:$0xf]  ;;  %v2452_v2 = vld [vmem:[#allocation4 + $0xc8] sm:$0xf0] }
  0x7c   :  { %1040 = vmatpush.bf16.msrb.mxu1 %v2435_v3 }
  0x7d   :  { %1051 = vmatpush.bf16.msrb.mxu2 %v2523_v4  ;;  %v2586_v4 = vld [vmem:[#allocation4 + $0x1d0] sm:$0xf] }
  0x7e   :  { %1079 = vmatpush.bf16.msrb.mxu3 %v2399_v35  ;;  %v2356_v35 = vld [vmem:[#allocation4 + $0x8] sm:$0xf0] }
  0x80   :  { %1041 = vmatpush.bf16.msrb.mxu1 %v2427_v15  ;;  %v3018_v15 = vld [vmem:[#allocation4 + $0x1f4] sm:$0xf] }
  0x81   :  { %1052 = vmatpush.bf16.msrb.mxu2 %v2515_v44  ;;  %v2587_v44 = vor.u32 %v3015_v5, %v2586_v4  ;;  %v2455_v5 = vor.u32 %v2980_v1, %v2452_v2  ;;  %v2607_v17 = vor.u32 %v3018_v15, %v2604_v16  ;;  %v3006_v1 = vld [vmem:[#allocation4 + $0x194] sm:$0xf]  ;;  %v2556_v2 = vld [vmem:[#allocation4 + $0x198] sm:$0xf0]  ;;  %v226_v16 = vperm.slane %v3527_v25, 3 }
  0x82   :  { %1080 = vmatpush.bf16.msrb.mxu3 %v2391_v51  ;;  %v2563_v51 = vor.u32 %v3009_v49, %v2562_v48  ;;  %v2972_v48 = vld [vmem:[#allocation4 + $0x84] sm:$0xf]  ;;  %v2420_v49 = vld [vmem:[#allocation4 + $0x88] sm:$0xf0] }
  0x83   :  { %1065 = vmatpush.bf16.msra.mxu0 %v2587_v44  ;;  %v3005_v44 = vld [vmem:[#allocation4 + $0x184] sm:$0xf0] }
  0x85   :  { %1053 = vmatpush.bf16.msrb.mxu2 %v2507_v45  ;;  %v2958_v45 = vld [vmem:[#allocation4 + $0x14] sm:$0xf] }
  0x86   :  { %1081 = vmatpush.bf16.msrb.mxu3 %v2383_v63  ;;  %v2367_v21 = vor.u32 %v2958_v45, %v2364_v18  ;;  %v2492_v63 = vld [vmem:[#allocation4 + $0x118] sm:$0xf0]  ;;  %v2978_v45 = vld [vmem:[#allocation4 + $0xb4] sm:$0xf] }
  0x87   :  { %1066 = vmatpush.bf16.msra.mxu0 %v2579_v12  ;;  %v2444_v12 = vld [vmem:[#allocation4 + $0xb8] sm:$0xf0] }
  0x88   :  { %v2447_v20 = vor.u32 %v2978_v45, %v2444_v12 }
  0x89   :  { %1054 = vmatpush.bf16.msrb.mxu2 %v2499_v23  ;;  %v2418_v23 = vld [vmem:[#allocation4 + $0x80] sm:$0xf] }
  0x8a   :  { %1082 = vmatpush.bf16.msrb.mxu3 %v2375_v10  ;;  %v2419_v26 = vor.u32 %v2973_v24, %v2418_v23  ;;  %v2547_v10 = vor.u32 %v3005_v44, %v2546_v6  ;;  %v3016_v23 = vld [vmem:[#allocation4 + $0x1e4] sm:$0xf]  ;;  %v2596_v24 = vld [vmem:[#allocation4 + $0x1e8] sm:$0xf0] }
  0x8b   :  { %1067 = vmatpush.bf16.msra.mxu0 %v2571_v34  ;;  %v2548_v6 = vld [vmem:[#allocation4 + $0x188] sm:$0xf0] }
  0x8c   :  { %1042 = vmatpush.bf16.msrb.mxu1 %v2419_v26  ;;  %v2599_v26 = vor.u32 %v3016_v23, %v2596_v24  ;;  %v3026_v24 = vld [vmem:[#allocation6 + $0x30] sm:$0xff] }
  0x8d   :  { %1055 = vmatpush.bf16.msrb.mxu2 %v2491_v32  ;;  %v2956_v32 = vld [vmem:[#allocation4 + $0x4] sm:$0xf] }
  0x8e   :  { %1083 = vmatpush.bf16.msrb.mxu3 %v2367_v21  ;;  %v2359_v39 = vor.u32 %v2956_v32, %v2356_v35  ;;  %v225_v21 = vperm.slane %v3527_v25, 2  ;;  %v3014_v35 = vld [vmem:[#allocation4 + $0x1d4] sm:$0xf]  ;;  %v3025_v25 = vld [vmem:[#allocation6 + $0x28] sm:$0xff] }
  0x8f   :  { %1068 = vmatpush.bf16.msra.mxu0 %v2563_v51  ;;  %v2591_v37 = vor.u32 %v3014_v35, %v2588_v36  ;;  %v2423_v51 = vor.u32 %v2972_v48, %v2420_v49  ;;  %v3032_v35 = vld [vmem:[#allocation6 + $0x60] sm:$0xff]  ;;  %v3031_v36 = vld [vmem:[#allocation6 + $0x58] sm:$0xff] }
  0x90   :  { %1091 = vmatpush.bf16.msra.mxu1 %v2479_v29 }
  0x91   :  { %1056 = vmatpush.bf16.msrb.mxu2 %v2483_v41  ;;  %v2984_v41 = vld [vmem:[#allocation4 + $0xe4] sm:$0xf] }
  0x92   :  { %v2471_v46 = vor.u32 %v2984_v41, %v2468_v42  ;;  %1084 = vmatpush.bf16.msrb.mxu3 %v2359_v39  ;;  %v2428_v39 = vld [vmem:[#allocation4 + $0x98] sm:$0xf0] }
  0x93   :  { %1069 = vmatpush.bf16.msra.mxu0 %v2555_v62  ;;  %v2564_v62 = vld [vmem:[#allocation4 + $0x1a8] sm:$0xf0] }
  0x94   :  { %1092 = vmatpush.bf16.msra.mxu1 %v2471_v46  ;;  %v2580_v46 = vld [vmem:[#allocation4 + $0x1c8] sm:$0xf0] }
  0x95   :  { %1105 = vmatpush.bf16.msra.mxu2 %v2543_v52  ;;  %v2500_v52 = vld [vmem:[#allocation4 + $0x128] sm:$0xf0] }
  0x96   :  { %v2503_v53 = vor.u32 %v2992_v50, %v2500_v52 }
  0x97   :  { %1070 = vmatpush.bf16.msra.mxu0 %v2547_v10 }
  0x98   :  { %1093 = vmatpush.bf16.msra.mxu1 %v2463_v57 }
  0x99   :  { %1106 = vmatpush.bf16.msra.mxu2 %v2535_v0  ;;  %v2495_v0 = vor.u32 %v2990_v60, %v2492_v63  ;;  %v3008_v60 = vld [vmem:[#allocation4 + $0x1a4] sm:$0xf] }
  0x9b   :  { %1119 = vmatpush.bf16.msrb.mxu0 %v2607_v17 }
  0x9c   :  { %1094 = vmatpush.bf16.msra.mxu1 %v2455_v5  ;;  %v3004_v5 = vld [vmem:[#allocation4 + $0x184] sm:$0xf] }
  0x9d   :  { %1107 = vmatpush.bf16.msra.mxu2 %v2527_v11  ;;  %v2484_v11 = vld [vmem:[#allocation4 + $0x108] sm:$0xf0] }
  0x9e   :  { %v2487_v14 = vor.u32 %v2988_v7, %v2484_v11 }
  0x9f   :  { %1120 = vmatpush.bf16.msrb.mxu0 %v2599_v26  ;;  %v3024_v26 = vld [vmem:[#allocation6 + $0x20] sm:$0xff] }
  0xa0   :  { %1095 = vmatpush.bf16.msra.mxu1 %v2447_v20 }
  0xa1   :  { %1108 = vmatpush.bf16.msra.mxu2 %v2519_v22 }
  0xa3   :  { %1121 = vmatpush.bf16.msrb.mxu0 %v2591_v37 }
  0xa4   :  { %1096 = vmatpush.bf16.msra.mxu1 %v2439_v31  ;;  %v3021_v31 = vld [vmem:[#allocation6 + $0x8] sm:$0xff] }
  0xa5   :  { %1109 = vmatpush.bf16.msra.mxu2 %v2511_v40 }
  0xa9   :  { %1110 = vmatpush.bf16.msra.mxu2 %v2503_v53 }
  0xad   :  { %1111 = vmatpush.bf16.msra.mxu2 %v2495_v0  ;;  %v2567_v0 = vor.u32 %v3008_v60, %v2564_v62 }
  0xb1   :  { %1112 = vmatpush.bf16.msra.mxu2 %v2487_v14 }
  0xc3   :  { %v3529_v33 = vpop.f32.mrf.mxu3  ;;  %v530_v38 = vpop.f32.mrf.mxu2 }
  0xc8   :  { %v516_v47 = vpop.f32.mrf.mxu0 }
  0xc9   :  { %v517_v56 = vadd.f32 %v516_v47, %v223_v43 }
  0xcb   :  { %v3532_v61 = vpop.f32.mrf.mxu3  ;;  %v531_v3 = vadd.f32 %v530_v38, %v517_v56  ;;  %v572_v4 = vpop.f32.mrf.mxu1  ;;  %v2974_v38 = vld [vmem:[#allocation4 + $0x94] sm:$0xf] }
  0xcc   :  { %v532_v9 = vpop.f32.mrf.mxu2  ;;  %v573_v32 = vadd.f32 %v572_v4, %v225_v21  ;;  %v2431_v40 = vor.u32 %v2974_v38, %v2428_v39  ;;  %v2559_v4 = vor.u32 %v3006_v1, %v2556_v2  ;;  %v3030_v39 = vld [vmem:[#allocation6 + $0x50] sm:$0xff] }
  0xcd   :  { %v619_v18 = vmax.f32 %v531_v3, 0.0  ;;  %v3054_v1 = vld [vmem:[#allocation7 + $0x94] sm:$0xf] }
  0xce   :  { %1097 = vmatpush.bf16.msra.mxu1 %v2431_v40  ;;  %v3029_v40 = vld [vmem:[#allocation6 + $0x48] sm:$0xff] }
  0xd0   :  { %v518_v8 = vpop.f32.mrf.mxu0 }
  0xd1   :  { %v519_v13 = vadd.f32 %v518_v8, %v223_v43  ;;  %v3012_v43 = vld [vmem:[#allocation4 + $0x1c4] sm:$0xf] }
  0xd2   :  { %v2583_v47 = vor.u32 %v3012_v43, %v2580_v46  ;;  %1098 = vmatpush.bf16.msra.mxu1 %v2423_v51  ;;  %v3058_v51 = vld [vmem:[#allocation7 + $0xb0] sm:$0xf0] }
  0xd3   :  { %v533_v19 = vadd.f32 %v532_v9, %v519_v13  ;;  %v574_v34 = vpop.f32.mrf.mxu1  ;;  %v2551_v9 = vor.u32 %v3004_v5, %v2548_v6  ;;  %v2754_v5 = vld [vmem:[#allocation7 + $0x98] sm:$0xf]  ;;  %v3056_v6 = vld [vmem:[#allocation7 + $0xa0] sm:$0xf0] }
  0xd4   :  { %v575_v42 = vadd.f32 %v574_v34, %v225_v21  ;;  %1122 = vmatpush.bf16.msrb.mxu0 %v2583_v47  ;;  %v3020_v34 = vld [vmem:[#allocation6] sm:$0xff] }
  0xd5   :  { %v623_v22 = vmax.f32 %v533_v19, 0.0  ;;  %v3028_v47 = vld [vmem:[#allocation6 + $0x40] sm:$0xff] }
  0xd7   :  { %v627_v29 = vpack.c.bf16 %v623_v22, %v619_v18  ;;  %v586_v30 = vpop.f32.mrf.mxu3 }
  0xd8   :  { %v587_v41 = vadd.f32 %v586_v30, %v573_v32  ;;  %1123 = vmatpush.bf16.msrb.mxu0 %v2575_v58  ;;  %v3034_v30 = vld [vmem:[#allocation6 + $0x70] sm:$0xff]  ;;  %v3033_v32 = vld [vmem:[#allocation6 + $0x68] sm:$0xff] }
  0xd9   :  { %1029 = vmatmul.bf16.vlgmr.msra.gmra.mxu3 %v627_v29 }
  0xda   :  { %v621_v52 = vmax.f32 %v587_v41, 0.0  ;;  %v695_v41 = vld [vmem:[%s3663_s4] sm:$0x3] }
  0xdb   :  { %v697_v46 = vperm.slane %v695_v41, 0 }
  0xdc   :  { %1124 = vmatpush.bf16.msrb.mxu0 %v2567_v0  ;;  %v3055_v0 = vld [vmem:[#allocation7 + $0x98] sm:$0xf0] }
  0xdf   :  { %v588_v50 = vpop.f32.mrf.mxu3 }
  0xe0   :  { %v589_v53 = vadd.f32 %v588_v50, %v575_v42  ;;  %1125 = vmatpush.bf16.msrb.mxu0 %v2559_v4  ;;  %v2758_v50 = vld [vmem:[#allocation7 + $0xa8] sm:$0xf]  ;;  %v2748_v4 = vld [vmem:[#allocation7 + $0x9c] sm:$0xf0] }
  0xe1   :  { %v2759_v54 = vor.u32 %v3058_v51, %v2758_v50  ;;  %v2724_v50 = vld [vmem:[#allocation7 + $0x6c] sm:$0xf0]  ;;  %v2730_v51 = vld [vmem:[#allocation7 + $0x68] sm:$0xf] }
  0xe2   :  { %v625_v56 = vmax.f32 %v589_v53, 0.0 }
  0xe3   :  { %v544_v57 = vpop.f32.mrf.mxu2 }
  0xe4   :  { %v629_v63 = vpack.c.bf16 %v625_v56, %v621_v52  ;;  %v545_v3 = vadd.f32 %v544_v57, %v224_v59  ;;  %1126 = vmatpush.bf16.msrb.mxu0 %v2551_v9  ;;  %v3057_v52 = vld [vmem:[#allocation7 + $0xac] sm:$0xf]  ;;  %v2766_v56 = vld [vmem:[#allocation7 + $0xb0] sm:$0xf]  ;;  %v3059_v57 = vld [vmem:[#allocation7 + $0xb8] sm:$0xf0] }
  0xe5   :  { %v2763_v60 = vor.u32 %v3057_v52, %v2760_v55  ;;  %v2767_v62 = vor.u32 %v3059_v57, %v2766_v56  ;;  %v3050_v52 = vld [vmem:[#allocation7 + $0x70] sm:$0xf0]  ;;  %v2710_v55 = vld [vmem:[#allocation7 + $0x48] sm:$0xf]  ;;  %v3045_v57 = vld [vmem:[#allocation7 + $0x4c] sm:$0xf] }
  0xe6   :  { %1057 = vmatmul.bf16.vlgmr.msrb.gmra.mxu2 %v629_v63  ;;  %v559_v7 = vadd.f32 %v3529_v33, %v545_v3  ;;  %v3046_v56 = vld [vmem:[#allocation7 + $0x50] sm:$0xf0] }
  0xe7   :  { %v600_v10 = vpop.f32.mrf.mxu0  ;;  %1468 = vmatpush.bf16.msrb.mxu2 %v2759_v54  ;;  %v2731_v54 = vor.u32 %v3050_v52, %v2730_v51 }
  0xe8   :  { %v620_v13 = vmax.f32 %v559_v7, 0.0  ;;  %v601_v45 = vadd.f32 %v600_v10, %v226_v16  ;;  %v2751_v7 = vor.u32 %v3054_v1, %v2748_v4  ;;  %v2698_v1 = vld [vmem:[#allocation7 + $0x30] sm:$0xf] }
  0xe9   :  { %1085 = vmatmul.bf16.vlgmr.msrb.gmra.mxu3 %v627_v29  ;;  %v3022_v29 = vld [vmem:[#allocation6 + $0x10] sm:$0xff] }
  0xeb   :  { %v546_v44 = vpop.f32.mrf.mxu2 }
  0xec   :  { %v547_v8 = vadd.f32 %v546_v44, %v224_v59 }
  0xee   :  { %v561_v11 = vadd.f32 %v3532_v61, %v547_v8  ;;  %v3027_v61 = vld [vmem:[#allocation6 + $0x38] sm:$0xff]  ;;  %v2755_v8 = vor.u32 %v3056_v6, %v2754_v5  ;;  %v2700_v5 = vld [vmem:[#allocation7 + $0x3c] sm:$0xf0] }
  0xef   :  { %v602_v12 = vpop.f32.mrf.mxu0  ;;  %1271 = vmatpush.bf16.msra.mxu3 %v3027_v61  ;;  %v2706_v6 = vld [vmem:[#allocation7 + $0x38] sm:$0xf] }
  0xf0   :  { %v624_v14 = vmax.f32 %v561_v11, 0.0  ;;  %v603_v18 = vadd.f32 %v602_v12, %v226_v16 }
  0xf2   :  { %v628_v15 = vpack.c.bf16 %v624_v14, %v620_v13 }
  0xf3   :  { %1272 = vmatpush.bf16.msra.mxu3 %v3026_v24 }
  0xf4   :  { %1043 = vmatmul.bf16.vlgmr.msrb.gmra.mxu1 %v628_v15 }
  0xf5   :  { %1285 = vmatpush.bf16.msrb.mxu1 %v3035_v28 }
  0xf6   :  { %1113 = vmatmul.bf16.vlgmr.msra.gmra.mxu2 %v629_v63  ;;  %v2746_v63 = vld [vmem:[#allocation7 + $0x90] sm:$0xf] }
  0xf7   :  { %v614_v17 = vpop.f32.mrf.mxu2  ;;  %1273 = vmatpush.bf16.msra.mxu3 %v3025_v25  ;;  %v2747_v3 = vor.u32 %v3055_v0, %v2746_v63 }
  0xf8   :  { %v615_v19 = vadd.f32 %v614_v17, %v601_v45  ;;  %v698_v17 = vperm.slane %v695_v41, 1  ;;  %v3053_v41 = vld [vmem:[#allocation7 + $0x88] sm:$0xf0] }
  0xf9   :  { %1286 = vmatpush.bf16.msrb.mxu1 %v3034_v30  ;;  %1469 = vmatpush.bf16.msrb.mxu2 %v2747_v3  ;;  %v3042_v3 = vld [vmem:[#allocation7 + $0x34] sm:$0xf] }
  0xfa   :  { %v622_v21 = vmax.f32 %v615_v19, 0.0 }
  0xfb   :  { %1274 = vmatpush.bf16.msra.mxu3 %v3024_v26 }
  0xfd   :  { %1287 = vmatpush.bf16.msrb.mxu1 %v3033_v32 }
  0xff   :  { %v616_v33 = vpop.f32.mrf.mxu2  ;;  %1275 = vmatpush.bf16.msra.mxu3 %v3023_v27 }
 0x100   :  { %v617_v20 = vadd.f32 %v616_v33, %v603_v18 }
 0x101   :  { %1288 = vmatpush.bf16.msrb.mxu1 %v3032_v35  ;;  %v2734_v35 = vld [vmem:[#allocation7 + $0x78] sm:$0xf] }
 0x102   :  { %v626_v22 = vmax.f32 %v617_v20, 0.0 }
 0x103   :  { %1276 = vmatpush.bf16.msra.mxu3 %v3022_v29 }
 0x104   :  { %v630_v23 = vpack.c.bf16 %v626_v22, %v622_v21  ;;  %1099 = vmatmul.bf16.vlgmr.msra.gmra.mxu1 %v628_v15 }
 0x105   :  { %1289 = vmatpush.bf16.msrb.mxu1 %v3031_v36  ;;  %v3052_v36 = vld [vmem:[#allocation7 + $0x80] sm:$0xf0] }
 0x106   :  { %1071 = vmatmul.bf16.vlgmr.msra.gmra.mxu0 %v630_v23 }
 0x107   :  { %1277 = vmatpush.bf16.msra.mxu3 %v3021_v31  ;;  %1482 = vmatpush.bf16.msra.mxu0 %v2763_v60  ;;  %v2718_v60 = vld [vmem:[#allocation7 + $0x50] sm:$0xf] }
 0x109   :  { %1290 = vmatpush.bf16.msrb.mxu1 %v3030_v39  ;;  %v2736_v39 = vld [vmem:[#allocation7 + $0x84] sm:$0xf0] }
 0x10b   :  { %1278 = vmatpush.bf16.msra.mxu3 %v3020_v34  ;;  %1483 = vmatpush.bf16.msra.mxu0 %v2751_v7  ;;  %v2703_v7 = vor.u32 %v3042_v3, %v2700_v5  ;;  %v3077_v5 = vld [vmem:[#allocation9 + $0x88] sm:$0xf0] }
 0x10d   :  { %1291 = vmatpush.bf16.msrb.mxu1 %v3029_v40  ;;  %v2742_v40 = vld [vmem:[#allocation7 + $0x80] sm:$0xf] }
 0x10f   :  { %1496 = vmatpush.bf16.msrb.mxu3 %v2767_v62  ;;  %v3047_v62 = vld [vmem:[#allocation7 + $0x58] sm:$0xf0] }
 0x110   :  { %v2719_v0 = vor.u32 %v3047_v62, %v2718_v60  ;;  %v2834_v60 = vld [vmem:[#allocation9 + $0x78] sm:$0xf]  ;;  %v3076_v62 = vld [vmem:[#allocation9 + $0x80] sm:$0xf0] }
 0x111   :  { %1292 = vmatpush.bf16.msrb.mxu1 %v3028_v47  ;;  %v3049_v47 = vld [vmem:[#allocation7 + $0x68] sm:$0xf0] }
 0x113   :  { %1497 = vmatpush.bf16.msrb.mxu3 %v2755_v8 }
 0x116   :  { %1127 = vmatmul.bf16.vlgmr.msrb.gmra.mxu0 %v630_v23 }
 0x15c   :  { %v1030_v37 = vpop.f32.mrf.mxu3 }
 0x15d   :  { %v1031_v49 = vadd.f32 %v1030_v37, %v697_v46  ;;  %v3051_v37 = vld [vmem:[#allocation7 + $0x7c] sm:$0xf] }
 0x164   :  { %v1032_v43 = vpop.f32.mrf.mxu3 }
 0x165   :  { %v1033_v58 = vadd.f32 %v1032_v43, %v697_v46  ;;  %v2743_v43 = vor.u32 %v3053_v41, %v2742_v40  ;;  %v2722_v46 = vld [vmem:[#allocation7 + $0x60] sm:$0xf]  ;;  %v2860_v40 = vld [vmem:[#allocation9 + $0xb4] sm:$0xf0]  ;;  %v2866_v41 = vld [vmem:[#allocation9 + $0xb0] sm:$0xf] }
 0x167   :  { %1498 = vmatpush.bf16.msrb.mxu3 %v2743_v43 }
 0x169   :  { %v1058_v42 = vpop.f32.mrf.mxu2 }
 0x16b   :  { %1499 = vmatpush.bf16.msrb.mxu3 %v2731_v54  ;;  %v2854_v54 = vld [vmem:[#allocation9 + $0x98] sm:$0xf] }
 0x16c   :  { %v1086_v9 = vpop.f32.mrf.mxu3 }
 0x16d   :  { %v1087_v20 = vadd.f32 %v1086_v9, %v698_v17  ;;  %v2686_v9 = vld [vmem:[#allocation7 + $0x18] sm:$0xf] }
 0x16f   :  { %1500 = vmatpush.bf16.msrb.mxu3 %v2719_v0  ;;  %v2835_v0 = vor.u32 %v3076_v62, %v2834_v60  ;;  %v3060_v60 = vld [vmem:[#allocation9 + $0x4] sm:$0xf]  ;;  %v2776_v62 = vld [vmem:[#allocation9 + $0xc] sm:$0xf0] }
 0x171   :  { %v1044_v38 = vpop.f32.mrf.mxu1  ;;  %v1060_v2 = vpop.f32.mrf.mxu2 }
 0x172   :  { %v1045_v59 = vadd.f32 %v1044_v38, %v1031_v49  ;;  %v2735_v38 = vor.u32 %v3052_v36, %v2734_v35  ;;  %v2723_v49 = vor.u32 %v3049_v47, %v2722_v46  ;;  %v3548_v35 = vld [vmem:[%s3667_s8] sm:$0x7]  ;;  %v2858_v36 = vld [vmem:[#allocation9 + $0xa8] sm:$0xf] }
 0x173   :  { %v1335_v43 = vperm.slane %v3548_v35, 1 }
 0x174   :  { %v1059_v10 = vadd.f32 %v1058_v42, %v1045_v59  ;;  %v1088_v33 = vpop.f32.mrf.mxu3  ;;  %v2739_v42 = vor.u32 %v3051_v37, %v2736_v39  ;;  %1470 = vmatpush.bf16.msrb.mxu2 %v2735_v38  ;;  %v2712_v59 = vld [vmem:[#allocation7 + $0x54] sm:$0xf0]  ;;  %v3082_v37 = vld [vmem:[#allocation9 + $0xb0] sm:$0xf0]  ;;  %v3081_v38 = vld [vmem:[#allocation9 + $0xac] sm:$0xf] }
 0x175   :  { %v1089_v23 = vadd.f32 %v1088_v33, %v698_v17  ;;  %v2715_v63 = vor.u32 %v3045_v57, %v2712_v59  ;;  %v2859_v39 = vor.u32 %v3082_v37, %v2858_v36  ;;  %v2863_v46 = vor.u32 %v3081_v38, %v2860_v40  ;;  %v2800_v36 = vld [vmem:[#allocation9 + $0x3c] sm:$0xf0]  ;;  %v2806_v37 = vld [vmem:[#allocation9 + $0x38] sm:$0xf]  ;;  %v3068_v38 = vld [vmem:[#allocation9 + $0x40] sm:$0xf0] }
 0x176   :  { %1484 = vmatpush.bf16.msra.mxu0 %v2739_v42  ;;  %v3083_v42 = vld [vmem:[#allocation9 + $0xb8] sm:$0xf0]  ;;  %v1334_v59 = vperm.slane %v3548_v35, 0 }
 0x177   :  { %v2867_v47 = vor.u32 %v3083_v42, %v2866_v41  ;;  %1769 = vmatpush.bf16.msra.mxu1 %v2859_v39  ;;  %v2807_v42 = vor.u32 %v3068_v38, %v2806_v37 }
 0x178   :  { %1471 = vmatpush.bf16.msrb.mxu2 %v2723_v49  ;;  %v3079_v49 = vld [vmem:[#allocation9 + $0x98] sm:$0xf0] }
 0x179   :  { %v1046_v48 = vpop.f32.mrf.mxu1  ;;  %v1114_v18 = vpop.f32.mrf.mxu2 }
 0x17a   :  { %v1047_v44 = vadd.f32 %v1046_v48, %v1033_v58  ;;  %v3048_v48 = vld [vmem:[#allocation7 + $0x64] sm:$0xf]  ;;  %v2711_v58 = vor.u32 %v3046_v56, %v2710_v55 }
 0x17b   :  { %v3080_v55 = vld [vmem:[#allocation9 + $0xa0] sm:$0xf0] }
 0x17c   :  { %v1061_v14 = vadd.f32 %v1060_v2, %v1047_v44  ;;  %1472 = vmatpush.bf16.msrb.mxu2 %v2711_v58  ;;  %v3043_v2 = vld [vmem:[#allocation7 + $0x38] sm:$0xf0]  ;;  %v3044_v44 = vld [vmem:[#allocation7 + $0x40] sm:$0xf0]  ;;  %v2855_v58 = vor.u32 %v3080_v55, %v2854_v54  ;;  %v2794_v54 = vld [vmem:[#allocation9 + $0x20] sm:$0xf] }
 0x17d   :  { %v2699_v4 = vor.u32 %v3043_v2, %v2698_v1  ;;  %v2707_v8 = vor.u32 %v3044_v44, %v2706_v6  ;;  %v3075_v1 = vld [vmem:[#allocation9 + $0x7c] sm:$0xf]  ;;  %v2836_v2 = vld [vmem:[#allocation9 + $0x84] sm:$0xf0]  ;;  %v3065_v55 = vld [vmem:[#allocation9 + $0x28] sm:$0xf0] }
 0x17e   :  { %v2839_v3 = vor.u32 %v3075_v1, %v2836_v2  ;;  %v3062_v1 = vld [vmem:[#allocation9 + $0x10] sm:$0xf0]  ;;  %v2779_v2 = vor.u32 %v3060_v60, %v2776_v62 }
 0x17f   :  { %1501 = vmatpush.bf16.msrb.mxu3 %v2707_v8  ;;  %v2822_v8 = vld [vmem:[#allocation9 + $0x60] sm:$0xf] }
 0x180   :  { %1473 = vmatpush.bf16.msrb.mxu2 %v2699_v4  ;;  %v2842_v4 = vld [vmem:[#allocation9 + $0x80] sm:$0xf] }
 0x181   :  { %v1100_v11 = vpop.f32.mrf.mxu1  ;;  %v1116_v26 = vpop.f32.mrf.mxu2  ;;  %v2843_v44 = vor.u32 %v3077_v5, %v2842_v4 }
 0x182   :  { %v1101_v61 = vadd.f32 %v1100_v11, %v1087_v20  ;;  %v3039_v11 = vld [vmem:[#allocation7 + $0x1c] sm:$0xf]  ;;  %v2676_v20 = vld [vmem:[#allocation7 + $0xc] sm:$0xf0] }
 0x183   :  { %v1072_v53 = vpop.f32.mrf.mxu0 }
 0x184   :  { %v1073_v13 = vadd.f32 %v1072_v53, %v1059_v10  ;;  %v1115_v25 = vadd.f32 %v1114_v18, %v1101_v61  ;;  %v2727_v53 = vor.u32 %v3048_v48, %v2724_v50  ;;  %v3040_v10 = vld [vmem:[#allocation7 + $0x20] sm:$0xf0]  ;;  %v3037_v18 = vld [vmem:[#allocation7 + $0x8] sm:$0xf0]  ;;  %v2846_v48 = vld [vmem:[#allocation9 + $0x90] sm:$0xf] }
 0x185   :  { %v3078_v50 = vld [vmem:[#allocation9 + $0x94] sm:$0xf]  ;;  %v2847_v52 = vor.u32 %v3079_v49, %v2846_v48 }
 0x186   :  { %v1133_v45 = vmax.f32 %v1073_v13, 0.0  ;;  %1485 = vmatpush.bf16.msra.mxu0 %v2727_v53  ;;  %v2687_v13 = vor.u32 %v3040_v10, %v2686_v9  ;;  %v2848_v53 = vld [vmem:[#allocation9 + $0x9c] sm:$0xf0]  ;;  %v3073_v9 = vld [vmem:[#allocation9 + $0x68] sm:$0xf0] }
 0x187   :  { %v2851_v57 = vor.u32 %v3078_v50, %v2848_v53  ;;  %1770 = vmatpush.bf16.msra.mxu1 %v2847_v52  ;;  %v3072_v10 = vld [vmem:[#allocation9 + $0x64] sm:$0xf]  ;;  %v3063_v50 = vld [vmem:[#allocation9 + $0x1c] sm:$0xf] }
 0x188   :  { %1474 = vmatpush.bf16.msrb.mxu2 %v2687_v13  ;;  %v2823_v13 = vor.u32 %v3073_v9, %v2822_v8 }
 0x189   :  { %v1102_v21 = vpop.f32.mrf.mxu1 }
 0x18a   :  { %v1103_v24 = vadd.f32 %v1102_v21, %v1089_v23  ;;  %1486 = vmatpush.bf16.msra.mxu0 %v2715_v63  ;;  %v2682_v21 = vld [vmem:[#allocation7 + $0x8] sm:$0xf] }
 0x18b   :  { %v1074_v15 = vpop.f32.mrf.mxu0  ;;  %1771 = vmatpush.bf16.msra.mxu1 %v2835_v0  ;;  %v2782_v0 = vld [vmem:[#allocation9 + $0x8] sm:$0xf] }
 0x18c   :  { %v1075_v16 = vadd.f32 %v1074_v15, %v1061_v14  ;;  %v1117_v28 = vadd.f32 %v1116_v26, %v1103_v24  ;;  %v2688_v14 = vld [vmem:[#allocation7 + $0x24] sm:$0xf0]  ;;  %v2694_v15 = vld [vmem:[#allocation7 + $0x20] sm:$0xf]  ;;  %v3107_v26 = vld [vmem:[%s3665_s6] ss:$0 sm:$0xff] }
 0x18d   :  { %v2691_v17 = vor.u32 %v3039_v11, %v2688_v14  ;;  %v2824_v14 = vld [vmem:[#allocation9 + $0x6c] sm:$0xf0] }
 0x18e   :  { %v1135_v12 = vmax.f32 %v1075_v16, 0.0  ;;  %v3041_v16 = vld [vmem:[#allocation7 + $0x28] sm:$0xf0]  ;;  %1487 = vmatpush.bf16.msra.mxu0 %v2703_v7 }
 0x18f   :  { %1772 = vmatpush.bf16.msra.mxu1 %v2823_v13 }
 0x190   :  { %v1137_v19 = vpack.c.bf16 %v1135_v12, %v1133_v45  ;;  %v2695_v45 = vor.u32 %v3041_v16, %v2694_v15  ;;  %v2674_v12 = vld [vmem:[#allocation7] sm:$0xf]  ;;  %v2830_v15 = vld [vmem:[#allocation9 + $0x68] sm:$0xf]  ;;  %v3074_v16 = vld [vmem:[#allocation9 + $0x70] sm:$0xf0] }
 0x191   :  { %v2675_v33 = vor.u32 %v3037_v18, %v2674_v12  ;;  %v2827_v12 = vor.u32 %v3072_v10, %v2824_v14  ;;  %v2831_v18 = vor.u32 %v3074_v16, %v2830_v15 }
 0x192   :  { %1279 = vmatmul.bf16.vlgmr.msra.gmra.mxu3 %v1137_v19  ;;  %1488 = vmatpush.bf16.msra.mxu0 %v2691_v17  ;;  %v3036_v19 = vld [vmem:[#allocation7 + $0x4] sm:$0xf] }
 0x193   :  { %v1128_v22 = vpop.f32.mrf.mxu0  ;;  %1502 = vmatpush.bf16.msrb.mxu3 %v2695_v45  ;;  %v2679_v23 = vor.u32 %v3036_v19, %v2676_v20  ;;  %1475 = vmatpush.bf16.msrb.mxu2 %v2675_v33  ;;  %v2810_v33 = vld [vmem:[#allocation9 + $0x48] sm:$0xf]  ;;  %v3070_v20 = vld [vmem:[#allocation9 + $0x50] sm:$0xf0] }
 0x194   :  { %v1129_v27 = vadd.f32 %v1128_v22, %v1115_v25  ;;  %v3038_v22 = vld [vmem:[#allocation7 + $0x10] sm:$0xf0] }
 0x195   :  { %v2683_v61 = vor.u32 %v3038_v22, %v2682_v21  ;;  %v2811_v21 = vor.u32 %v3070_v20, %v2810_v33  ;;  %v3069_v22 = vld [vmem:[#allocation9 + $0x4c] sm:$0xf] }
 0x196   :  { %v1134_v31 = vmax.f32 %v1129_v27, 0.0  ;;  %1489 = vmatpush.bf16.msra.mxu0 %v2679_v23  ;;  %v2812_v23 = vld [vmem:[#allocation9 + $0x54] sm:$0xf0] }
 0x197   :  { %1503 = vmatpush.bf16.msrb.mxu3 %v2683_v61  ;;  %1783 = vmatpush.bf16.msra.mxu2 %v2863_v46  ;;  %v2815_v61 = vor.u32 %v3069_v22, %v2812_v23  ;;  %v3064_v46 = vld [vmem:[#allocation9 + $0x20] sm:$0xf0]  ;;  %v1336_v23 = vperm.slane %v3548_v35, 2 }
 0x198   :  { %1773 = vmatpush.bf16.msra.mxu1 %v2811_v21 }
 0x19a   :  { %1797 = vmatpush.bf16.msrb.mxu0 %v2867_v47 }
 0x19b   :  { %v1130_v29 = vpop.f32.mrf.mxu0  ;;  %1784 = vmatpush.bf16.msra.mxu2 %v2851_v57  ;;  %v3061_v57 = vld [vmem:[#allocation9 + $0x8] sm:$0xf0] }
 0x19c   :  { %v1131_v30 = vadd.f32 %v1130_v29, %v1117_v28 }
 0x19e   :  { %v1136_v32 = vmax.f32 %v1131_v30, 0.0  ;;  %1798 = vmatpush.bf16.msrb.mxu0 %v2855_v58 }
 0x19f   :  { %1785 = vmatpush.bf16.msra.mxu2 %v2839_v3  ;;  %v2783_v3 = vor.u32 %v3062_v1, %v2782_v0  ;;  %v3091_v1 = vld [vmem:[#allocation10 + $0x38] sm:$0xff] }
 0x1a0   :  { %v1138_v34 = vpack.c.bf16 %v1136_v32, %v1134_v31  ;;  %1970 = vmatpush.bf16.msra.mxu3 %v3091_v1 }
 0x1a2   :  { %1293 = vmatmul.bf16.vlgmr.msrb.gmra.mxu1 %v1138_v34  ;;  %1799 = vmatpush.bf16.msrb.mxu0 %v2843_v44 }
 0x1a3   :  { %1786 = vmatpush.bf16.msra.mxu2 %v2827_v12 }
 0x1a6   :  { %1800 = vmatpush.bf16.msrb.mxu0 %v2831_v18 }
 0x1a7   :  { %1787 = vmatpush.bf16.msra.mxu2 %v2815_v61 }
 0x215   :  { %v1280_v24 = vpop.f32.mrf.mxu3 }
 0x216   :  { %v1281_v28 = vadd.f32 %v3107_v26, %v1280_v24  ;;  %v2818_v24 = vld [vmem:[#allocation9 + $0x50] sm:$0xf] }
 0x21d   :  { %v1282_v27 = vpop.f32.mrf.mxu3 }
 0x21e   :  { %v1283_v29 = vadd.f32 %v3107_v26, %v1282_v27 }
 0x21f   :  { %v1294_v25 = vpop.f32.mrf.mxu1 }
 0x220   :  { %v1295_v31 = vadd.f32 %v1294_v25, %v1281_v28  ;;  %v3071_v25 = vld [vmem:[#allocation9 + $0x58] sm:$0xf0] }
 0x221   :  { %v2819_v28 = vor.u32 %v3071_v25, %v2818_v24 }
 0x223   :  { %1801 = vmatpush.bf16.msrb.mxu0 %v2819_v28 }
 0x227   :  { %v1296_v30 = vpop.f32.mrf.mxu1  ;;  %1802 = vmatpush.bf16.msrb.mxu0 %v2807_v42 }
 0x228   :  { %v1297_v32 = vadd.f32 %v1296_v30, %v1283_v29  ;;  %v2798_v30 = vld [vmem:[#allocation9 + $0x30] sm:$0xf] }
 0x22a   :  { %v1299_v34 = vpack.c.bf16 %v1297_v32, %v1295_v31  ;;  %v3067_v31 = vld [vmem:[#allocation9 + $0x38] sm:$0xf0]  ;;  %v3066_v32 = vld [vmem:[#allocation9 + $0x34] sm:$0xf] }
 0x22b   :  { %v2803_v41 = vor.u32 %v3066_v32, %v2800_v36 }
 0x22c   :  { %1476 = vmatmul.bf16.vlgmr.msrb.gmra.mxu2 %v1299_v34  ;;  %1490 = vmatmul.bf16.vlgmr.msra.gmra.mxu0 %v1299_v34 }
 0x22d   :  { %1504 = vmatmul.bf16.vlgmr.msrb.gmra.mxu3 %v1299_v34  ;;  %v2799_v34 = vor.u32 %v3067_v31, %v2798_v30  ;;  %1788 = vmatpush.bf16.msra.mxu2 %v2803_v41 }
 0x22f   :  { %1774 = vmatpush.bf16.msra.mxu1 %v2799_v34 }
 0x2a9   :  { %v1491_v51 = vpop.f32.mrf.mxu0 }
 0x2aa   :  { %v1492_v56 = vadd.f32 %v1491_v51, %v1335_v43  ;;  %v2788_v51 = vld [vmem:[#allocation9 + $0x24] sm:$0xf0] }
 0x2ab   :  { %v2791_v53 = vor.u32 %v3063_v50, %v2788_v51 }
 0x2ac   :  { %v2770_v63 = vmul.f32 -1.442695, %v1492_v56  ;;  %v2774_v56 = vld [vmem:[#allocation9] sm:$0xf] }
 0x2ad   :  { %1789 = vmatpush.bf16.msra.mxu2 %v2791_v53 }
 0x2ae   :  { %3113 = vpow2.f32 %v2770_v63  ;;  %v2775_v63 = vor.u32 %v3061_v57, %v2774_v56 }
 0x2af   :  { %v1477_v6 = vpop.f32.mrf.mxu2 }
 0x2b0   :  { %v1478_v7 = vadd.f32 %v1477_v6, %v1334_v59  ;;  %v1505_v15 = vpop.f32.mrf.mxu3 }
 0x2b1   :  { %v1493_v11 = vpop.f32.mrf.mxu0  ;;  %1790 = vmatpush.bf16.msra.mxu2 %v2779_v2  ;;  %v1506_v30 = vadd.f32 %v1505_v15, %v1336_v23  ;;  %v3088_v15 = vld [vmem:[#allocation10 + $0x20] sm:$0xff] }
 0x2b2   :  { %v2768_v17 = vmul.f32 -1.442695, %v1478_v7  ;;  %v1494_v45 = vadd.f32 %v1493_v11, %v1335_v43  ;;  %v2786_v43 = vld [vmem:[#allocation9 + $0x18] sm:$0xf] }
 0x2b3   :  { %v2787_v49 = vor.u32 %v3064_v46, %v2786_v43 }
 0x2b4   :  { %3115 = vpow2.f32 %v2768_v17  ;;  %v2771_v19 = vmul.f32 -1.442695, %v1494_v45  ;;  %v3114_v26 = vpop.eup %3113 }
 0x2b5   :  { %v3552_v47 = vadd.f32 1.0, %v3114_v26  ;;  %1775 = vmatpush.bf16.msra.mxu1 %v2787_v49 }
 0x2b6   :  { %3117 = vpow2.f32 %v2771_v19  ;;  %v3108_v19 = vld [vmem:[%s3668_s9] ss:$0 sm:$0xff] }
 0x2b7   :  { %v1479_v27 = vpop.f32.mrf.mxu2  ;;  %vm1561_vm8 = vweird.f32 %v3552_v47  ;;  %v1565_v46 = vand.u32 2147483647, %v3552_v47 }
 0x2b8   :  { %v1480_v29 = vadd.f32 %v1479_v27, %v1334_v59  ;;  %v2795_v59 = vor.u32 %v3065_v55, %v2794_v54  ;;  %v1507_v32 = vpop.f32.mrf.mxu3 }
 0x2b9   :  { %1776 = vmatpush.bf16.msra.mxu1 %v2775_v63  ;;  %v1508_v42 = vadd.f32 %v1507_v32, %v1336_v23  ;;  %vm1566_vm0 = vcmp.eq.f32.partialorder %v1565_v46, 8.507059e+37  ;;  %v3589_v63 = vld [vmem:[%s3670_s11] sm:$0x7] }
 0x2ba   :  { %v3116_v39 = vpop.eup %3115  ;;  %v2769_v40 = vmul.f32 -1.442695, %v1480_v29  ;;  %1803 = vmatpush.bf16.msrb.mxu0 %v2795_v59  ;;  %v1635_v0 = vperm.slane %v3589_v63, 0  ;;  %v1637_v46 = vperm.slane %v3589_v63, 2 }
 0x2bb   :  { %v1516_v48 = vadd.f32 1.0, %v3116_v39 }
 0x2bc   :  { %v3118_v52 = vpop.eup %3117  ;;  %3119 = vpow2.f32 %v2769_v40  ;;  %v1567_v40 = vand.u32 2147483648, %v3552_v47 }
 0x2bd   :  { %3121 = vrcp.f32 %v1516_v48  ;;  %v3554_v58 = vadd.f32 1.0, %v3118_v52  ;;  %v1529_v10 = vand.u32 2147483648, %v1516_v48  ;;  %v1527_v13 = vand.u32 2147483647, %v1516_v48 }
 0x2be   :  { %3123 = vrcp.f32 %v3552_v47  ;;  %1804 = vmatpush.bf16.msrb.mxu0 %v2783_v3  ;;  %vm1523_vm3 = vweird.f32 %v1516_v48  ;;  %v1568_v52 = vor.u32 1.1754944e-38, %v1567_v40  ;;  %v3109_v40 = vld [vmem:[%s3671_s12] ss:$0 sm:$0xff] }
 0x2bf   :  { %3125 = vrcp.f32 %v3554_v58  ;;  %v1530_v12 = vor.u32 1.1754944e-38, %v1529_v10  ;;  %vm1528_vm5 = vcmp.eq.f32.partialorder %v1527_v13, 8.507059e+37  ;;  %v1582_v41 = vand.u32 2147483648, %v3554_v58 }
 0x2c0   :  { %vm1576_vm13 = vweird.f32 %v3554_v58 }
 0x2c1   :  { %v1583_v53 = vor.u32 1.1754944e-38, %v1582_v41 }
 0x2c2   :  { %v3120_v4 = vpop.eup %3119 }
 0x2c3   :  { %v3122_v5 = vpop.eup %3121  ;;  %v1517_v6 = vadd.f32 1.0, %v3120_v4 }
 0x2c4   :  { %v1519_v44 = vmul.f32 %v3122_v5, %v1516_v48  ;;  %v3558_v7 = vpop.eup %3123  ;;  %vm1524_vm2 = vweird.f32 %v3122_v5  ;;  %v1580_v48 = vand.u32 2147483647, %v3554_v58 }
 0x2c5   :  { %3127 = vrcp.f32 %v1517_v6  ;;  %v3560_v8 = vpop.eup %3125  ;;  %v1557_v14 = vmul.f32 %v3558_v7, %v3552_v47  ;;  %vm1525_vm4 = vmor %vm1523_vm3, %vm1524_vm2  ;;  %v1544_v24 = vand.u32 2147483648, %v1517_v6  ;;  %v1542_v27 = vand.u32 2147483647, %v1517_v6 }
 0x2c6   :  { %v1520_v9 = vsub.f32 1.0, %v1519_v44  ;;  %v1572_v16 = vmul.f32 %v3560_v8, %v3554_v58  ;;  %vm1538_vm7 = vweird.f32 %v1517_v6  ;;  %vm1562_vm11 = vweird.f32 %v3558_v7 }
 0x2c7   :  { %v1558_v20 = vsub.f32 1.0, %v1557_v14  ;;  %v1545_v34 = vor.u32 1.1754944e-38, %v1544_v24  ;;  %vm1543_vm10 = vcmp.eq.f32.partialorder %v1542_v27, 8.507059e+37  ;;  %vm1577_vm12 = vweird.f32 %v3560_v8  ;;  %vm1563_vm14 = vmor %vm1561_vm8, %vm1562_vm11  ;;  %v3085_v24 = vld [vmem:[#allocation10 + $0x8] sm:$0xff] }
 0x2c8   :  { %v1521_v11 = vmul.f32 %v3122_v5, %v1520_v9  ;;  %v1573_v22 = vsub.f32 1.0, %v1572_v16  ;;  %vm1578_vm15 = vmor %vm1576_vm13, %vm1577_vm12  ;;  %vm1581_vm1 = vcmp.eq.f32.partialorder %v1580_v48, 8.507059e+37 }
 0x2c9   :  { %v1559_v28 = vmul.f32 %v3558_v7, %v1558_v20 }
 0x2ca   :  { %v1522_v17 = vadd.f32 %v3122_v5, %v1521_v11  ;;  %v1574_v29 = vmul.f32 %v3560_v8, %v1573_v22 }
 0x2cb   :  { %v3128_v45 = vpop.eup %3127  ;;  %v1560_v38 = vadd.f32 %v3558_v7, %v1559_v28 }
 0x2cc   :  { %v1526_v18 = vsel %vm1525_vm4, %v3122_v5, %v1522_v17  ;;  %v1534_v33 = vmul.f32 %v3128_v45, %v1517_v6  ;;  %vm1539_vm6 = vweird.f32 %v3128_v45  ;;  %v1575_v39 = vadd.f32 %v3560_v8, %v1574_v29  ;;  %v3090_v6 = vld [vmem:[#allocation10 + $0x30] sm:$0xff]  ;;  %v3087_v17 = vld [vmem:[#allocation10 + $0x18] sm:$0xff] }
 0x2cd   :  { %v1531_v21 = vsel %vm1528_vm5, %v1530_v12, %v1526_v18  ;;  %vm1540_vm9 = vmor %vm1538_vm7, %vm1539_vm6  ;;  %v1564_v50 = vsel %vm1563_vm14, %v3558_v7, %v1560_v38  ;;  %v1636_v5 = vperm.slane %v3589_v63, 1  ;;  %1971 = vmatpush.bf16.msra.mxu3 %v3090_v6 }
 0x2ce   :  { %v1535_v61 = vsub.f32 1.0, %v1534_v33  ;;  %v1590_v25 = vmul.f32 %v3108_v19, %v1531_v21  ;;  %v1579_v51 = vsel %vm1578_vm15, %v3560_v8, %v1575_v39  ;;  %v1569_v54 = vsel %vm1566_vm0, %v1568_v52, %v1564_v50  ;;  %v3089_v8 = vld [vmem:[#allocation10 + $0x28] sm:$0xff]  ;;  %v3086_v33 = vld [vmem:[#allocation10 + $0x10] sm:$0xff] }
 0x2cf   :  { %v1584_v55 = vsel %vm1581_vm1, %v1583_v53, %v1579_v51  ;;  %v1596_v57 = vsub.f32 1.0, %v1569_v54 }
 0x2d0   :  { %v1536_v26 = vmul.f32 %v3128_v45, %v1535_v61  ;;  %v1592_v36 = vadd.f32 %v1590_v25, %v1506_v30  ;;  %v1597_v59 = vsub.f32 1.0, %v1584_v55 }
 0x2d1   :  { %1972 = vmatpush.bf16.msra.mxu3 %v3089_v8 }
 0x2d2   :  { %v1537_v31 = vadd.f32 %v3128_v45, %v1536_v26  ;;  %3129 = vtanh.f32 %v1592_v36 }
 0x2d4   :  { %v1541_v35 = vsel %vm1540_vm9, %v3128_v45, %v1537_v31  ;;  %v3084_v31 = vld [vmem:[#allocation10] sm:$0xff] }
 0x2d5   :  { %v1546_v37 = vsel %vm1543_vm10, %v1545_v34, %v1541_v35  ;;  %1973 = vmatpush.bf16.msra.mxu3 %v3088_v15 }
 0x2d6   :  { %v1591_v43 = vmul.f32 %v3108_v19, %v1546_v37 }
 0x2d8   :  { %v1593_v49 = vadd.f32 %v1591_v43, %v1508_v42  ;;  %v3130_v56 = vpop.eup %3129 }
 0x2d9   :  { %v1598_v60 = vmul.f32 %v3130_v56, %v1596_v57  ;;  %1974 = vmatpush.bf16.msra.mxu3 %v3087_v17 }
 0x2da   :  { %3131 = vtanh.f32 %v1593_v49 }
 0x2dd   :  { %1975 = vmatpush.bf16.msra.mxu3 %v3086_v33 }
 0x2e0   :  { %v3132_v47 = vpop.eup %3131 }
 0x2e1   :  { %v1599_v58 = vmul.f32 %v3132_v47, %v1597_v59  ;;  %1976 = vmatpush.bf16.msra.mxu3 %v3085_v24 }
 0x2e3   :  { %v1600_v62 = vpack.c.bf16 %v1599_v58, %v1598_v60 }
 0x2e5   :  { %1777 = vmatmul.bf16.vlgmr.msra.gmra.mxu1 %v1600_v62  ;;  %1791 = vmatmul.bf16.vlgmr.msra.gmra.mxu2 %v1600_v62 }
 0x2e6   :  { %1805 = vmatmul.bf16.vlgmr.msrb.gmra.mxu0 %v1600_v62  ;;  %1977 = vmatpush.bf16.msra.mxu3 %v3084_v31  ;;  %v2019_v31 = vld [vmem:[#allocation12 + $0x70] sm:$0xff] }
 0x362   :  { %v1778_v2 = vpop.f32.mrf.mxu1 }
 0x363   :  { %v1779_v3 = vadd.f32 %v1778_v2, %v1635_v0  ;;  %v1806_v25 = vpop.f32.mrf.mxu0 }
 0x364   :  { %v1807_v56 = vadd.f32 %v1806_v25, %v1637_v46 }
 0x365   :  { %v2868_v4 = vmul.f32 -1.442695, %v1779_v3 }
 0x367   :  { %3133 = vpow2.f32 %v2868_v4 }
 0x368   :  { %v1792_v44 = vpop.f32.mrf.mxu2 }
 0x369   :  { %v1793_v7 = vadd.f32 %v1792_v44, %v1636_v5 }
 0x36a   :  { %v1780_v9 = vpop.f32.mrf.mxu1 }
 0x36b   :  { %v2870_v10 = vmul.f32 -1.442695, %v1793_v7  ;;  %v1781_v11 = vadd.f32 %v1780_v9, %v1635_v0  ;;  %v1808_v51 = vpop.f32.mrf.mxu0 }
 0x36c   :  { %v1809_v47 = vadd.f32 %v1808_v51, %v1637_v46  ;;  %v2014_v46 = vld [vmem:[#allocation12 + $0x48] sm:$0xff]  ;;  %v2013_v51 = vld [vmem:[#allocation12 + $0x40] sm:$0xff] }
 0x36d   :  { %v3134_v13 = vpop.eup %3133  ;;  %3135 = vpow2.f32 %v2870_v10  ;;  %v2869_v14 = vmul.f32 -1.442695, %v1781_v11 }
 0x36e   :  { %v1817_v16 = vadd.f32 1.0, %v3134_v13 }
 0x36f   :  { %3137 = vpow2.f32 %v2869_v14 }
 0x370   :  { %3139 = vrcp.f32 %v1817_v16  ;;  %v1794_v45 = vpop.f32.mrf.mxu2  ;;  %v1830_v27 = vand.u32 2147483648, %v1817_v16  ;;  %v1828_v30 = vand.u32 2147483647, %v1817_v16  ;;  %vm1824_vm3 = vweird.f32 %v1817_v16 }
 0x371   :  { %v1795_v12 = vadd.f32 %v1794_v45, %v1636_v5 }
 0x372   :  { %v1831_v38 = vor.u32 1.1754944e-38, %v1830_v27  ;;  %vm1829_vm5 = vcmp.eq.f32.partialorder %v1828_v30, 8.507059e+37  ;;  %v2020_v30 = vld [vmem:[#allocation12 + $0x78] sm:$0xff] }
 0x373   :  { %v3136_v18 = vpop.eup %3135  ;;  %v2871_v19 = vmul.f32 -1.442695, %v1795_v12  ;;  %2024 = vmatpush.msrb.mxu1 %v2020_v30 }
 0x374   :  { %v3593_v20 = vadd.f32 1.0, %v3136_v18 }
 0x375   :  { %v3138_v21 = vpop.eup %3137  ;;  %3141 = vpow2.f32 %v2871_v19  ;;  %2025 = vmatpush.msrb.mxu1 %v2019_v31 }
 0x376   :  { %v3140_v22 = vpop.eup %3139  ;;  %3143 = vrcp.f32 %v3593_v20  ;;  %v1818_v23 = vadd.f32 1.0, %v3138_v21  ;;  %v1868_v0 = vand.u32 2147483648, %v3593_v20  ;;  %vm1862_vm12 = vweird.f32 %v3593_v20 }
 0x377   :  { %v1820_v61 = vmul.f32 %v3140_v22, %v1817_v16  ;;  %vm1825_vm2 = vweird.f32 %v3140_v22  ;;  %v1866_v6 = vand.u32 2147483647, %v3593_v20 }
 0x378   :  { %3145 = vrcp.f32 %v1818_v23  ;;  %vm1826_vm4 = vmor %vm1824_vm3, %vm1825_vm2  ;;  %v1845_v49 = vand.u32 2147483648, %v1818_v23  ;;  %v1843_v53 = vand.u32 2147483647, %v1818_v23  ;;  %vm1839_vm7 = vweird.f32 %v1818_v23 }
 0x379   :  { %v1821_v26 = vsub.f32 1.0, %v1820_v61  ;;  %v1869_v10 = vor.u32 1.1754944e-38, %v1868_v0  ;;  %vm1867_vm0 = vcmp.eq.f32.partialorder %v1866_v6, 8.507059e+37 }
 0x37a   :  { %v1846_v60 = vor.u32 1.1754944e-38, %v1845_v49  ;;  %vm1844_vm9 = vcmp.eq.f32.partialorder %v1843_v53, 8.507059e+37 }
 0x37b   :  { %v3142_v28 = vpop.eup %3141  ;;  %v1822_v29 = vmul.f32 %v3140_v22, %v1821_v26 }
 0x37c   :  { %v3596_v32 = vpop.eup %3143  ;;  %v1856_v34 = vadd.f32 1.0, %v3142_v28 }
 0x37d   :  { %v1823_v36 = vadd.f32 %v3140_v22, %v1822_v29  ;;  %v1858_v35 = vmul.f32 %v3596_v32, %v3593_v20  ;;  %vm1863_vm10 = vweird.f32 %v3596_v32  ;;  %v3614_v20 = vld [vmem:[%s3675_s16] sm:$0x1] }
 0x37e   :  { %v3146_v37 = vpop.eup %3145  ;;  %3147 = vrcp.f32 %v1856_v34  ;;  %v1883_v5 = vand.u32 2147483648, %v1856_v34  ;;  %v1881_v44 = vand.u32 2147483647, %v1856_v34  ;;  %vm1877_vm13 = vweird.f32 %v1856_v34  ;;  %vm1864_vm14 = vmor %vm1862_vm12, %vm1863_vm10 }
 0x37f   :  { %v1827_v39 = vsel %vm1826_vm4, %v3140_v22, %v1823_v36  ;;  %v1835_v41 = vmul.f32 %v3146_v37, %v1818_v23  ;;  %v1859_v43 = vsub.f32 1.0, %v1858_v35  ;;  %vm1840_vm6 = vweird.f32 %v3146_v37  ;;  %v3110_v23 = vld [vmem:[%s3673_s14] ss:$0 sm:$0xff]  ;;  %v2018_v35 = vld [vmem:[#allocation12 + $0x68] sm:$0xff] }
 0x380   :  { %v1832_v42 = vsel %vm1829_vm5, %v1831_v38, %v1827_v39  ;;  %vm1841_vm8 = vmor %vm1839_vm7, %vm1840_vm6  ;;  %v1884_v13 = vor.u32 1.1754944e-38, %v1883_v5  ;;  %vm1882_vm1 = vcmp.eq.f32.partialorder %v1881_v44, 8.507059e+37  ;;  %v1988_v21 = vsub.f32 1.0, %v3614_v20  ;;  %v2017_v38 = vld [vmem:[#allocation12 + $0x60] sm:$0xff]  ;;  %2026 = vmatpush.msrb.mxu1 %v2018_v35  ;;  %v2016_v39 = vld [vmem:[#allocation12 + $0x58] sm:$0xff] }
 0x381   :  { %v1836_v48 = vsub.f32 1.0, %v1835_v41  ;;  %v1891_v50 = vmul.f32 %v3109_v40, %v1832_v42  ;;  %v1860_v55 = vmul.f32 %v3596_v32, %v1859_v43  ;;  %v2015_v41 = vld [vmem:[#allocation12 + $0x50] sm:$0xff] }
 0x382   :  { %v1989_v22 = vmul.f32 1e+30, %v1988_v21  ;;  %2027 = vmatpush.msrb.mxu1 %v2017_v38  ;;  %v2022_v35 = vperm.slane %v1988_v21, 0 }
 0x383   :  { %v1837_v52 = vmul.f32 %v3146_v37, %v1836_v48  ;;  %v1893_v58 = vadd.f32 %v1891_v50, %v1807_v56  ;;  %v1861_v2 = vadd.f32 %v3596_v32, %v1860_v55  ;;  %v2012_v55 = vld [vmem:[#allocation12 + $0x38] sm:$0xff] }
 0x384   :  { %v3148_v54 = vpop.eup %3147  ;;  %v1991_v61 = vperm.slane %v1989_v22, 0  ;;  %2028 = vmatpush.msrb.mxu1 %v2016_v39  ;;  %v2008_v22 = vld [vmem:[#allocation12 + $0x18] sm:$0xff] }
 0x385   :  { %v1838_v57 = vadd.f32 %v3146_v37, %v1837_v52  ;;  %v1873_v59 = vmul.f32 %v3148_v54, %v1856_v34  ;;  %vm1878_vm11 = vweird.f32 %v3148_v54  ;;  %3149 = vtanh.f32 %v1893_v58  ;;  %v3111_v58 = vld [vmem:[%s3674_s15] ss:$0 sm:$0xff] }
 0x386   :  { %v1865_v9 = vsel %vm1864_vm14, %v3596_v32, %v1861_v2  ;;  %vm1879_vm15 = vmor %vm1877_vm13, %vm1878_vm11  ;;  %2029 = vmatpush.msrb.mxu1 %v2015_v41 }
 0x387   :  { %v1842_v62 = vsel %vm1841_vm8, %v3146_v37, %v1838_v57  ;;  %v1874_v63 = vsub.f32 1.0, %v1873_v59  ;;  %v1870_v14 = vsel %vm1867_vm0, %v1869_v10, %v1865_v9 }
 0x388   :  { %v1847_v1 = vsel %vm1844_vm9, %v1846_v60, %v1842_v62  ;;  %v1897_v17 = vsub.f32 1.0, %v1870_v14  ;;  %2030 = vmatpush.msrb.mxu1 %v2014_v46 }
 0x389   :  { %v1892_v3 = vmul.f32 %v3109_v40, %v1847_v1  ;;  %v1875_v4 = vmul.f32 %v3148_v54, %v1874_v63  ;;  %v1984_v40 = vld [vmem:[%s3674_s15] sm:$0x1] }
 0x38a   :  { %v1986_v43 = vsub.f32 1.0, %v1984_v40  ;;  %2031 = vmatpush.msrb.mxu1 %v2013_v51 }
 0x38b   :  { %v1894_v7 = vadd.f32 %v1892_v3, %v1809_v47  ;;  %v1876_v8 = vadd.f32 %v3148_v54, %v1875_v4  ;;  %v3150_v16 = vpop.eup %3149  ;;  %v2011_v47 = vld [vmem:[#allocation12 + $0x30] sm:$0xff] }
 0x38c   :  { %v1899_v18 = vmul.f32 %v3150_v16, %v1897_v17  ;;  %2032 = vmatpush.msrb.mxu1 %v2012_v55 }
 0x38d   :  { %3151 = vtanh.f32 %v1894_v7  ;;  %v1880_v11 = vsel %vm1879_vm15, %v3148_v54, %v1876_v8  ;;  %v1987_v54 = vsub.f32 %v1986_v43, %v3614_v20  ;;  %v3112_v20 = vld [vmem:[%s3675_s16] ss:$0 sm:$0xff] }
 0x38e   :  { %v1885_v15 = vsel %vm1882_vm1, %v1884_v13, %v1880_v11  ;;  %2033 = vmatpush.msrb.mxu1 %v2011_v47 }
 0x38f   :  { %v1898_v45 = vsub.f32 1.0, %v1885_v15  ;;  %v2120_v63 = vperm.slane %v1987_v54, 0 }
 0x393   :  { %v3152_v12 = vpop.eup %3151 }
 0x394   :  { %v1900_v19 = vmul.f32 %v3152_v12, %v1898_v45 }
 0x396   :  { %v1901_v33 = vpack.c.bf16 %v1900_v19, %v1899_v18  ;;  %v2010_v19 = vld [vmem:[#allocation12 + $0x28] sm:$0xff] }
 0x397   :  { %2034 = vmatpush.msrb.mxu1 %v2010_v19 }
 0x398   :  { %1978 = vmatmul.bf16.vlgmr.msra.gmra.mxu3 %v1901_v33  ;;  %v2009_v33 = vld [vmem:[#allocation12 + $0x20] sm:$0xff] }
 0x399   :  { %2035 = vmatpush.msrb.mxu1 %v2009_v33 }
 0x39b   :  { %2036 = vmatpush.msrb.mxu1 %v2008_v22 }
 0x41b   :  { %v1979_v24 = vpop.f32.mrf.mxu3 }
 0x41c   :  { %v1980_v25 = vadd.f32 %v3110_v23, %v1979_v24  ;;  %v2005_v24 = vld [vmem:[#allocation12] sm:$0xff] }
 0x41e   :  { %v2904_v26 = vmul.f32 -1.442695, %v1980_v25  ;;  %v3622_v27 = vsub.f32 %v1980_v25, %v1991_v61  ;;  %v2115_v53 = vmax.f32 %v1980_v25, 0.0 }
 0x420   :  { %3153 = vpow2.f32 %v2904_v26  ;;  %1995 = vmax.xlane.f32.xlu0 %v3622_v27  ;;  %v2117_v60 = vmul.f32 100.0, %v2115_v53 }
 0x422   :  { %v2127_v5 = vmul.f32 %v3111_v58, %v2117_v60 }
 0x423   :  { %v1981_v28 = vpop.f32.mrf.mxu3 }
 0x424   :  { %v3625_v29 = vadd.f32 %v3110_v23, %v1981_v28  ;;  %v2007_v23 = vld [vmem:[#allocation12 + $0x10] sm:$0xff] }
 0x425   :  { %2037 = vmatpush.msrb.mxu1 %v2007_v23 }
 0x426   :  { %v3154_v32 = vpop.eup %3153  ;;  %v2905_v34 = vmul.f32 -1.442695, %v3625_v29  ;;  %v3629_v36 = vsub.f32 %v3625_v29, %v1991_v61  ;;  %v2116_v7 = vmax.f32 %v3625_v29, 0.0  ;;  %v2006_v61 = vld [vmem:[#allocation12 + $0x8] sm:$0xff] }
 0x427   :  { %v2083_v37 = vadd.f32 1.0, %v3154_v32  ;;  %2038 = vmatpush.msrb.mxu1 %v2006_v61 }
 0x428   :  { %3155 = vpow2.f32 %v2905_v34  ;;  %1997 = vmax.xlane.f32.xlu0 %v3629_v36  ;;  %v2118_v14 = vmul.f32 100.0, %v2116_v7 }
 0x429   :  { %3157 = vrcp.f32 %v2083_v37  ;;  %v2096_v56 = vand.u32 2147483648, %v2083_v37  ;;  %v2094_v59 = vand.u32 2147483647, %v2083_v37  ;;  %vm2090_vm3 = vweird.f32 %v2083_v37  ;;  %2039 = vmatpush.msrb.mxu1 %v2005_v24 }
 0x42a   :  { %v2128_v12 = vmul.f32 %v3111_v58, %v2118_v14 }
 0x42b   :  { %v2097_v1 = vor.u32 1.1754944e-38, %v2096_v56  ;;  %vm2095_vm5 = vcmp.eq.f32.partialorder %v2094_v59, 8.507059e+37 }
 0x42e   :  { %v3156_v42 = vpop.eup %3155 }
 0x42f   :  { %v3158_v48 = vpop.eup %3157  ;;  %v2084_v49 = vadd.f32 1.0, %v3156_v42 }
 0x430   :  { %v2086_v50 = vmul.f32 %v3158_v48, %v2083_v37  ;;  %vm2091_vm2 = vweird.f32 %v3158_v48 }
 0x431   :  { %3159 = vrcp.f32 %v2084_v49  ;;  %vm2092_vm4 = vmor %vm2090_vm3, %vm2091_vm2  ;;  %v2111_v8 = vand.u32 2147483648, %v2084_v49  ;;  %v2109_v11 = vand.u32 2147483647, %v2084_v49  ;;  %vm2105_vm7 = vweird.f32 %v2084_v49 }
 0x432   :  { %v2087_v52 = vsub.f32 1.0, %v2086_v50 }
 0x433   :  { %v2112_v15 = vor.u32 1.1754944e-38, %v2111_v8  ;;  %vm2110_vm9 = vcmp.eq.f32.partialorder %v2109_v11, 8.507059e+37 }
 0x434   :  { %v2088_v57 = vmul.f32 %v3158_v48, %v2087_v52 }
 0x436   :  { %v2089_v62 = vadd.f32 %v3158_v48, %v2088_v57 }
 0x437   :  { %v3160_v0 = vpop.eup %3159 }
 0x438   :  { %v2093_v2 = vsel %vm2092_vm4, %v3158_v48, %v2089_v62  ;;  %v2101_v3 = vmul.f32 %v3160_v0, %v2084_v49  ;;  %vm2106_vm6 = vweird.f32 %v3160_v0 }
 0x439   :  { %v2098_v4 = vsel %vm2095_vm5, %v2097_v1, %v2093_v2  ;;  %vm2107_vm8 = vmor %vm2105_vm7, %vm2106_vm6 }
 0x43a   :  { %v2122_v6 = vmul.f32 %v2120_v63, %v2098_v4  ;;  %v2102_v44 = vsub.f32 1.0, %v2101_v3 }
 0x43c   :  { %v3640_v9 = vadd.f32 %v2127_v5, %v2122_v6  ;;  %v2103_v10 = vmul.f32 %v3160_v0, %v2102_v44 }
 0x43e   :  { %v2104_v13 = vadd.f32 %v3160_v0, %v2103_v10 }
 0x440   :  { %v2108_v16 = vsel %vm2107_vm8, %v3160_v0, %v2104_v13 }
 0x441   :  { %v2113_v17 = vsel %vm2110_vm9, %v2112_v15, %v2108_v16 }
 0x442   :  { %v2123_v45 = vmul.f32 %v2120_v63, %v2113_v17 }
 0x444   :  { %v3642_v18 = vadd.f32 %v2128_v12, %v2123_v45 }
 0x493   :  { %v1996_v25 = vpop.xlane.xlu0 %1995 }
 0x494   :  { %v1999_v26 = vsub.f32 %v3622_v27, %v1996_v25 }
 0x496   :  { %v2001_v28 = vmul.f32 1.442695, %v1999_v26 }
 0x498   :  { %3161 = vpow2.f32 %v2001_v28 }
 0x49b   :  { %v1998_v29 = vpop.xlane.xlu0 %1997 }
 0x49c   :  { %v2000_v30 = vsub.f32 %v3629_v36, %v1998_v29 }
 0x49e   :  { %v3162_v31 = vpop.eup %3161  ;;  %v2003_v32 = vmul.f32 1.442695, %v2000_v30 }
 0x49f   :  { %2040 = vmatmul.f32.vlgmr.msrb.gmra.mxu1 %v3162_v31 }
 0x4a0   :  { %3163 = vpow2.f32 %v2003_v32 }
 0x4a6   :  { %v3164_v34 = vpop.eup %3163 }
 0x4a7   :  { %2043 = vmatmul.f32.gmra.mxu1 %v3164_v34 }
 0x51c   :  { %v2041_v37 = vpop.f32.mrf.mxu1 }
 0x51d   :  { %v2042_v38 = vadd.f32 %v2041_v37, %v2022_v35 }
 0x51f   :  { %3165 = vrcp.f32 %v2042_v38  ;;  %v2058_v43 = vand.u32 2147483648, %v2042_v38  ;;  %v2056_v46 = vand.u32 2147483647, %v2042_v38  ;;  %vm2052_vm11 = vweird.f32 %v2042_v38 }
 0x521   :  { %v2059_v50 = vor.u32 1.1754944e-38, %v2058_v43  ;;  %vm2057_vm13 = vcmp.eq.f32.partialorder %v2056_v46, 8.507059e+37 }
 0x524   :  { %v2044_v39 = vpop.f32.mrf.mxu1 }
 0x525   :  { %v3166_v40 = vpop.eup %3165  ;;  %v2045_v27 = vadd.f32 %v2044_v39, %v2022_v35 }
 0x526   :  { %v2048_v41 = vmul.f32 %v3166_v40, %v2042_v38  ;;  %vm2053_vm10 = vweird.f32 %v3166_v40 }
 0x527   :  { %3167 = vrcp.f32 %v2045_v27  ;;  %vm2054_vm12 = vmor %vm2052_vm11, %vm2053_vm10  ;;  %v2073_v55 = vand.u32 2147483648, %v2045_v27  ;;  %v2071_v59 = vand.u32 2147483647, %v2045_v27  ;;  %vm2067_vm15 = vweird.f32 %v2045_v27 }
 0x528   :  { %v2049_v42 = vsub.f32 1.0, %v2048_v41 }
 0x529   :  { %v2074_v58 = vor.u32 1.1754944e-38, %v2073_v55  ;;  %vm2072_vm1 = vcmp.eq.f32.partialorder %v2071_v59, 8.507059e+37 }
 0x52a   :  { %v2050_v36 = vmul.f32 %v3166_v40, %v2049_v42 }
 0x52c   :  { %v2051_v48 = vadd.f32 %v3166_v40, %v2050_v36 }
 0x52d   :  { %v3168_v49 = vpop.eup %3167 }
 0x52e   :  { %v2055_v21 = vsel %vm2054_vm12, %v3166_v40, %v2051_v48  ;;  %v2063_v51 = vmul.f32 %v3168_v49, %v2045_v27  ;;  %vm2068_vm14 = vweird.f32 %v3168_v49 }
 0x52f   :  { %v2060_v52 = vsel %vm2057_vm13, %v2059_v50, %v2055_v21  ;;  %vm2069_vm0 = vmor %vm2067_vm15, %vm2068_vm14 }
 0x530   :  { %v2061_v53 = vmul.f32 %v3162_v31, %v2060_v52  ;;  %v2064_v54 = vsub.f32 1.0, %v2063_v51 }
 0x532   :  { %v2134_v56 = vmul.f32 %v3112_v20, %v2061_v53  ;;  %v2065_v57 = vmul.f32 %v3168_v49, %v2064_v54 }
 0x534   :  { %v2136_v47 = vadd.f32 %v2134_v56, %v3640_v9  ;;  %v2066_v60 = vadd.f32 %v3168_v49, %v2065_v57 }
 0x536   :  { %2138 = vst [vmem:[%s3677_s18] sm:$0xff] %v2136_v47  ;;  %v2070_v62 = vsel %vm2069_vm0, %v3168_v49, %v2066_v60 }
 0x537   :  { %v2075_v63 = vsel %vm2072_vm1, %v2074_v58, %v2070_v62 }
 0x538   :  { %v2076_v0 = vmul.f32 %v3164_v34, %v2075_v63 }
 0x53a   :  { %v2135_v1 = vmul.f32 %v3112_v20, %v2076_v0 }
 0x53c   :  { %v2137_v2 = vadd.f32 %v2135_v1, %v3642_v18 }
 0x53e   :  { %2139 = vst [vmem:[%s3677_s18 + $0x8] sm:$0xff] %v2137_v2 }
 0x53f   :  { %2144 = vsyncpa [#allocation3], 1 }
 0x540   :  { %2145 = vsyncpa [#allocation5], 1 }
 0x541   :  { %2146 = vsyncpa [#allocation8], 1 }
 0x542   :  { %2147 = vsyncpa [#allocation11], 1 }

</bundles_post_ra>
